<compile_context>
chip_gen: v6e
topology: v6e:2x2x1
jax: 0.10.0
libtpu: 0.0.40
codegen_flags: <defaults>
</compile_context>

<pallas_src>
import functools

import jax
import jax.numpy as jnp
from jax import lax
from jax.experimental import pallas as pl
from jax.experimental.pallas import tpu as pltpu

LANE = 128          # TPU lane width; feature/class dims are padded to this.
NUM_GIN_LAYERS = 2  # conv1, conv2


# ----------------------------- Pallas kernel --------------------------------

def _gin_net_fused_kernel(x_ref, adj_ref, w_ref, b_ref, out_ref,
                          h_scr, agg_scr, *, eps, tile_k):
    """Fused GINConv x2 + fc + log_softmax.

    Grid: (layer, src_block).  adj_ref is a (Np, tile_k) bf16 tile of the dense
    adjacency A[dst, src]; h_scr holds the current node features (f32, resident),
    agg_scr accumulates the neighbor sum for the current layer.
    """
    layer = pl.program_id(0)
    k = pl.program_id(1)
    nk = pl.num_programs(1)

    # First grid step: load node features into the resident scratch.
    @pl.when((layer == 0) & (k == 0))
    def _():
        h_scr[...] = x_ref[...]

    # New layer: reset the neighbor-sum accumulator.
    @pl.when(k == 0)
    def _():
        agg_scr[...] = jnp.zeros_like(agg_scr)

    # agg[dst] += sum over this source block of A[dst, src] * h[src]
    src0 = pl.multiple_of(k * tile_k, tile_k)
    h_src = h_scr[pl.ds(src0, tile_k), :].astype(jnp.bfloat16)
    agg_scr[...] += jnp.dot(adj_ref[...], h_src,
                            preferred_element_type=jnp.float32)

    # Last source block of this layer: apply the (BN-folded) 3-layer MLP.
    @pl.when(k == nk - 1)
    def _():
        h = h_scr[...]
        if eps != 0.0:                       # eps is a static Python float
            z = (1.0 + eps) * h + agg_scr[...]
        else:
            z = h + agg_scr[...]
        for j in range(3):                   # [Linear(+BN), ReLU] x3
            idx = 3 * layer + j
            w = w_ref[idx]                   # (LANE, LANE) bf16
            b = b_ref[idx]                   # (1, LANE) f32
            z = jnp.dot(z.astype(jnp.bfloat16), w,
                        preferred_element_type=jnp.float32) + b
            z = jnp.maximum(z, 0.0)
        h_scr[...] = z
        # Outer F.relu after each conv is a no-op (MLP already ends in ReLU);
        # F.dropout(training=False) is the identity.

    # Very last grid step: fc + log_softmax.  Padded class lanes carry a -1e30
    # bias (set in the wrapper), so no in-kernel mask is needed.
    @pl.when((layer == NUM_GIN_LAYERS - 1) & (k == nk - 1))
    def _():
        h2 = h_scr[...]
        logits = jnp.dot(h2.astype(jnp.bfloat16), w_ref[6],
                         preferred_element_type=jnp.float32) + b_ref[6]
        m = jnp.max(logits, axis=-1, keepdims=True)
        lse = jnp.log(jnp.sum(jnp.exp(logits - m), axis=-1, keepdims=True)) + m
        out_ref[...] = (logits - lse).astype(out_ref.dtype)


# ------------------------------ JAX wrappers ---------------------------------

def _round_up(n, m):
    return ((n + m - 1) // m) * m


def _pad2d(a, rows, cols, fill=0.0):
    r, c = a.shape
    return jnp.pad(a, ((0, rows - r), (0, cols - c)), constant_values=fill)


def _pick_tile_k(n_pad):
    for t in (512, 256, 128):
        if n_pad % t == 0:
            return t
    return n_pad


def _vmem_limit_bytes(n_pad, tile_k):
    # Per-step footprint: adj tile (bf16, double-buffered), x, packed weights,
    # biases, output block, h + agg scratch.  2x headroom for compiler temps.
    need = (2 * n_pad * tile_k * 2
            + n_pad * LANE * 4
            + 7 * LANE * LANE * 2 + 8 * LANE * 4
            + n_pad * LANE * 4
            + 2 * n_pad * LANE * 4)
    # Cap at 48 MiB so the budget is safe on v7x (64 MiB physical VMEM).
    # On v5e/v6e (128 MiB) this cap can be raised toward ~100 MiB for big graphs.
    return int(min(max(2 * need, 32 << 20), 48 << 20))


def gin_net_fused(x_pad, adj_pad, w_pack, b_pack, *, eps=0.0):
    """x_pad: (Np, 128) f32, adj_pad: (Np, Np) bf16,
    w_pack: (7, 128, 128) bf16, b_pack: (8, 1, 128) f32."""
    n_pad = x_pad.shape[0]
    tile_k = _pick_tile_k(n_pad)
    assert n_pad % tile_k == 0
    nk = n_pad // tile_k

    kernel = functools.partial(_gin_net_fused_kernel, eps=eps, tile_k=tile_k)
    return pl.pallas_call(
        kernel,
        out_shape=jax.ShapeDtypeStruct((n_pad, LANE), jnp.float32),
        grid_spec=pltpu.PrefetchScalarGridSpec(
            num_scalar_prefetch=0,
            grid=(NUM_GIN_LAYERS, nk),
            in_specs=[
                pl.BlockSpec((n_pad, LANE), lambda l, k: (0, 0)),       # x
                pl.BlockSpec((n_pad, tile_k), lambda l, k: (0, k)),     # adj tile
                pl.BlockSpec((7, LANE, LANE), lambda l, k: (0, 0, 0)),  # weights
                pl.BlockSpec((8, 1, LANE), lambda l, k: (0, 0, 0)),     # biases
            ],
            out_specs=pl.BlockSpec((n_pad, LANE), lambda l, k: (0, 0)),
            scratch_shapes=[
                pltpu.VMEM((n_pad, LANE), jnp.float32),   # h (resident features)
                pltpu.VMEM((n_pad, LANE), jnp.float32),   # agg accumulator
            ],
        ),
        compiler_params=pltpu.CompilerParams(
            # Both axes carry state (h across layers, agg across src blocks).
            # TODO(synk): a dst-node parallel axis (v7x megacore) would require
            # un-fusing the two GIN layers; kept fused here.
            dimension_semantics=("arbitrary", "arbitrary"),
            vmem_limit_bytes=_vmem_limit_bytes(n_pad, tile_k)),
    )(x_pad, adj_pad, w_pack, b_pack)


def _pack_params(params, num_classes):
    """Pack the 7 (weight, bias) pairs into (7,128,128) bf16 + (8,1,128) f32."""
    pairs = params["conv1"] + params["conv2"] + [params["fc"]]
    mats, biases = [], []
    for i, (w, b) in enumerate(pairs):
        mats.append(_pad2d(w, LANE, LANE))
        if i == len(pairs) - 1:
            # fc bias: padded class lanes -> -1e30 (replaces in-kernel mask).
            b_pad = _pad2d(b, 1, LANE, fill=-1e30)
        else:
            b_pad = _pad2d(b, 1, LANE)
        biases.append(b_pad)
    w_pack = jnp.stack(mats, axis=0).astype(jnp.bfloat16)            # (7,128,128)
    b_pack = jnp.concatenate(biases + [jnp.zeros((1, LANE), jnp.float32)],
                             axis=0).reshape(8, 1, LANE)             # (8,1,128)
    return w_pack, b_pack


@functools.partial(jax.jit, static_argnames=("num_nodes", "num_classes"))
def gin_net_forward(x, edge_index, edge_attr, params, *, num_nodes, num_classes):
    del edge_attr  # GINConv.forward ignores edge_attr
    num_features = x.shape[1]
    hidden = params["conv1"][0][0].shape[1]
    assert num_features <= LANE and hidden <= LANE and num_classes <= LANE, \
        "feature/hidden/class dims > 128 lanes not supported by this kernel"

    n_pad = max(LANE, _round_up(num_nodes, LANE))
    x_pad = _pad2d(x, n_pad, LANE)
    # Dense padded adjacency A[dst, src], stored bf16 (multiplicities are exact).
    adj_pad = (jnp.zeros((n_pad, n_pad), jnp.float32)
               .at[edge_index[1], edge_index[0]].add(1.0)
               .astype(jnp.bfloat16))
    w_pack, b_pack = _pack_params(params, num_classes)

    out_pad = gin_net_fused(x_pad, adj_pad, w_pack, b_pack, eps=0.0)
    return out_pad[:num_nodes, :num_classes]


# --------------------------- parameter construction --------------------------

def _init_linear(key, fan_in, fan_out):
    """Deterministic small-scale init; W: (fan_in, fan_out), b: (1, fan_out)."""
    kw, kb = jax.random.split(key)
    bound = 1.0 / jnp.sqrt(fan_in)
    w = jax.random.uniform(kw, (fan_in, fan_out), jnp.float32, -bound, bound)
    b = jax.random.uniform(kb, (1, fan_out), jnp.float32, -bound, bound)
    return w, b


def _fold_bn(w, b, gamma, beta, running_mean, running_var, bn_eps=1e-5):
    """Fold eval-mode BatchNorm1d into a preceding Linear (x @ W + b)."""
    scale = gamma / jnp.sqrt(running_var + bn_eps)
    w_f = w * scale[None, :]
    b_f = (b - running_mean[None, :]) * scale[None, :] + beta[None, :]
    return w_f, b_f


def make_gin_mlp_params(key, fan_in, hidden):
    """[Linear, BN, ReLU] x3 with BN folded in (eval mode, default BN init)."""
    keys = jax.random.split(key, 3)
    layers = []
    dims_in = [fan_in, hidden, hidden]
    for k, din in zip(keys, dims_in):
        w, b = _init_linear(k, din, hidden)
        gamma = jnp.ones((hidden,), jnp.float32)
        beta = jnp.zeros((hidden,), jnp.float32)
        rmean = jnp.zeros((hidden,), jnp.float32)
        rvar = jnp.ones((hidden,), jnp.float32)
        layers.append(_fold_bn(w, b, gamma, beta, rmean, rvar))
    return layers  # [(w1, b1), (w2, b2), (w3, b3)]


# ----------------------------- pure-JAX reference ----------------------------

def reference_forward(x, edge_index, params):
    n = x.shape[0]
    adj = jnp.zeros((n, n), jnp.float32).at[edge_index[1], edge_index[0]].add(1.0)

    def mlp(h, layers):
        for w, b in layers:
            h = jnp.maximum(h @ w + b, 0.0)
        return h

    h = x
    for layers in (params["conv1"], params["conv2"]):
        h = mlp(h + adj @ h, layers)
    wfc, bfc = params["fc"]
    return jax.nn.log_softmax(h @ wfc + bfc, axis=1)


# ----------------------------------- main ------------------------------------

if __name__ == "__main__":
    NUM_NODES = 32
    NUM_FEATURES = 16
    HIDDEN_SIZE = 32
    NUM_CLASSES = 8
    NUM_EDGES = 96

    root = jax.random.PRNGKey(0)
    k_x, k_e, k_c1, k_c2, k_fc = jax.random.split(root, 5)

    # inputs
    x = jax.random.normal(k_x, (NUM_NODES, NUM_FEATURES), jnp.float32)
    edge_index = jax.random.randint(k_e, (2, NUM_EDGES), 0, NUM_NODES, jnp.int32)
    edge_attr = jax.random.normal(jax.random.fold_in(k_e, 1),
                                  (NUM_EDGES, 4), jnp.float32)  # unused by GINConv

    # parameters (deterministic, eval-mode BN folded into Linears)
    params = {
        "conv1": make_gin_mlp_params(k_c1, NUM_FEATURES, HIDDEN_SIZE),
        "conv2": make_gin_mlp_params(k_c2, HIDDEN_SIZE, HIDDEN_SIZE),
        "fc": _init_linear(k_fc, HIDDEN_SIZE, NUM_CLASSES),
    }

    out = gin_net_forward(x, edge_index, edge_attr, params,
                          num_nodes=NUM_NODES, num_classes=NUM_CLASSES)
    out = jax.block_until_ready(out)

    assert out.shape == (NUM_NODES, NUM_CLASSES)
    # rows of log_softmax must (exp-)sum to ~1
    row_sums = jnp.sum(jnp.exp(out), axis=1)
    assert bool(jnp.all(jnp.abs(row_sums - 1.0) < 1e-2)), row_sums
    assert bool(jnp.all(jnp.isfinite(out)))

    # compare against the f32 pure-JAX reference (bf16 MXU -> loose tolerance)
    ref = reference_forward(x, edge_index, params)
    max_err = float(jnp.max(jnp.abs(out - ref)))
    assert max_err < 0.15, f"max |out - ref| = {max_err}"

    print("KERNEL_OK")
</pallas_src>

<mosaic_0001>
module attributes {stable_mosaic.version = 11 : i64} {
  func.func private @main(%arg0: i32) attributes {dimension_semantics = [#tpu.dimension_semantics<core_parallel>], iteration_bounds = array<i64: 2>, tpu.core_type = #tpu.core_type<sc_scalar_subcore>, window_params = []} {
    return
  }
}

module attributes {stable_mosaic.version = 11 : i64} {
  func.func private @main(%arg0: i32) attributes {dimension_semantics = [#tpu.dimension_semantics<core_parallel>], iteration_bounds = array<i64: 2>, tpu.core_type = #tpu.core_type<sc_scalar_subcore>, window_params = []} {
    return
  }
}

module attributes {stable_mosaic.version = 11 : i64} {
  func.func @_gin_net_fused_kernel(%arg0: i32, %arg1: i32, %arg2: memref<128x128xf32, #tpu.memory_space<vmem>>, %arg3: memref<128x128xbf16, #tpu.memory_space<vmem>>, %arg4: memref<7x128x128xbf16, #tpu.memory_space<vmem>>, %arg5: memref<8x1x128xf32, #tpu.memory_space<vmem>>, %arg6: memref<128x128xf32, #tpu.memory_space<vmem>>, %arg7: memref<128x128xf32, #tpu.memory_space<vmem>>, %arg8: memref<128x128xf32, #tpu.memory_space<vmem>>) attributes {dimension_semantics = [#tpu.dimension_semantics<arbitrary>, #tpu.dimension_semantics<arbitrary>], iteration_bounds = array<i64: 2, 1>, scalar_prefetch = 0 : i64, scratch_operands = 2 : i64, tpu.core_type = #tpu.core_type<tc>, window_params = [{pipeline_mode = #tpu.pipeline_mode<synchronous>, transform_indices = @transform_0, window_bounds = array<i64: 128, 128>}, {transform_indices = @transform_1, window_bounds = array<i64: 128, 128>}, {pipeline_mode = #tpu.pipeline_mode<synchronous>, transform_indices = @transform_2, window_bounds = array<i64: 7, 128, 128>}, {pipeline_mode = #tpu.pipeline_mode<synchronous>, transform_indices = @transform_3, window_bounds = array<i64: 8, 1, 128>}, {pipeline_mode = #tpu.pipeline_mode<synchronous>, transform_indices = @transform_4, window_bounds = array<i64: 128, 128>}]} {
    %c0_i32 = arith.constant 0 : i32
    %0 = arith.cmpi eq, %arg0, %c0_i32 : i32
    %c0_i32_0 = arith.constant 0 : i32
    %1 = arith.cmpi eq, %arg1, %c0_i32_0 : i32
    %2 = arith.andi %0, %1 : i1
    %3 = arith.extui %2 : i1 to i32
    %c0_i32_1 = arith.constant 0 : i32
    %4 = arith.cmpi ne, %3, %c0_i32_1 : i32
    scf.if %4 {
      %c0_14 = arith.constant 0 : index
      %c0_15 = arith.constant 0 : index
      %26 = vector.load %arg2[%c0_14, %c0_15] : memref<128x128xf32, #tpu.memory_space<vmem>>, vector<128x128xf32>
      %c0_16 = arith.constant 0 : index
      %c0_17 = arith.constant 0 : index
      %27 = vector.load %arg7[%c0_16, %c0_17] : memref<128x128xf32, #tpu.memory_space<vmem>>, vector<128x128xf32>
      tpu.vector_store %arg7[%c0_16, %c0_17], %26 {strides = array<i32>} : memref<128x128xf32, #tpu.memory_space<vmem>>, vector<128x128xf32>,
    } else {
    }
    %c0_i32_2 = arith.constant 0 : i32
    %5 = arith.cmpi eq, %arg1, %c0_i32_2 : i32
    %6 = arith.extui %5 : i1 to i32
    %c0_i32_3 = arith.constant 0 : i32
    %7 = arith.cmpi ne, %6, %c0_i32_3 : i32
    scf.if %7 {
      %cst_14 = arith.constant 0.000000e+00 : f32
      %26 = vector.broadcast %cst_14 : f32 to vector<128x128xf32>
      %c0_15 = arith.constant 0 : index
      %c0_16 = arith.constant 0 : index
      %27 = vector.load %arg8[%c0_15, %c0_16] : memref<128x128xf32, #tpu.memory_space<vmem>>, vector<128x128xf32>
      tpu.vector_store %arg8[%c0_15, %c0_16], %26 {strides = array<i32>} : memref<128x128xf32, #tpu.memory_space<vmem>>, vector<128x128xf32>,
    } else {
    }
    %c128_i32 = arith.constant 128 : i32
    %8 = arith.muli %arg1, %c128_i32 : i32
    %9 = tpu.assume_multiple %8, 128 : i32
    %10 = arith.index_cast %9 : i32 to index
    %c0 = arith.constant 0 : index
    %11 = vector.load %arg7[%10, %c0] : memref<128x128xf32, #tpu.memory_space<vmem>>, vector<128x128xf32>
    %12 = arith.truncf %11 : vector<128x128xf32> to vector<128x128xbf16>
    %c0_4 = arith.constant 0 : index
    %c0_5 = arith.constant 0 : index
    %13 = vector.load %arg8[%c0_4, %c0_5] : memref<128x128xf32, #tpu.memory_space<vmem>>, vector<128x128xf32>
    %c0_6 = arith.constant 0 : index
    %c0_7 = arith.constant 0 : index
    %14 = vector.load %arg3[%c0_6, %c0_7] : memref<128x128xbf16, #tpu.memory_space<vmem>>, vector<128x128xbf16>
    %cst = arith.constant dense<0.000000e+00> : vector<128x128xf32>
    %15 = tpu.matmul %14, %12, %cst {dimension_numbers = #tpu.dot_dimension_numbers<[1], [0], [0], [1], [0, 0, 1, 1], [], []>} : vector<128x128xbf16>, vector<128x128xbf16>, vector<128x128xf32> -> vector<128x128xf32>
    %16 = arith.addf %13, %15 : vector<128x128xf32>
    %c0_8 = arith.constant 0 : index
    %c0_9 = arith.constant 0 : index
    %17 = vector.load %arg8[%c0_8, %c0_9] : memref<128x128xf32, #tpu.memory_space<vmem>>, vector<128x128xf32>
    tpu.vector_store %arg8[%c0_8, %c0_9], %16 {strides = array<i32>} : memref<128x128xf32, #tpu.memory_space<vmem>>, vector<128x128xf32>,
    %c0_i32_10 = arith.constant 0 : i32
    %18 = arith.cmpi eq, %arg1, %c0_i32_10 : i32
    %19 = arith.extui %18 : i1 to i32
    %c0_i32_11 = arith.constant 0 : i32
    %20 = arith.cmpi ne, %19, %c0_i32_11 : i32
    scf.if %20 {
      %c0_14 = arith.constant 0 : index
      %c0_15 = arith.constant 0 : index
      %26 = vector.load %arg7[%c0_14, %c0_15] : memref<128x128xf32, #tpu.memory_space<vmem>>, vector<128x128xf32>
      %c0_16 = arith.constant 0 : index
      %c0_17 = arith.constant 0 : index
      %27 = vector.load %arg8[%c0_16, %c0_17] : memref<128x128xf32, #tpu.memory_space<vmem>>, vector<128x128xf32>
      %28 = arith.addf %26, %27 : vector<128x128xf32>
      %c3_i32 = arith.constant 3 : i32
      %29 = arith.muli %c3_i32, %arg0 : i32
      %c0_i32_18 = arith.constant 0 : i32
      %30 = arith.addi %29, %c0_i32_18 : i32
      %31 = arith.index_cast %30 : i32 to index
      %c0_19 = arith.constant 0 : index
      %c0_20 = arith.constant 0 : index
      %32 = vector.load %arg4[%31, %c0_19, %c0_20] : memref<7x128x128xbf16, #tpu.memory_space<vmem>>, vector<1x128x128xbf16>
      %33 = vector.shape_cast %32 : vector<1x128x128xbf16> to vector<128x128xbf16>
      %34 = arith.index_cast %30 : i32 to index
      %c0_21 = arith.constant 0 : index
      %c0_22 = arith.constant 0 : index
      %35 = vector.load %arg5[%34, %c0_21, %c0_22] : memref<8x1x128xf32, #tpu.memory_space<vmem>>, vector<1x1x128xf32>
      %36 = vector.shape_cast %35 : vector<1x1x128xf32> to vector<1x128xf32>
      %37 = arith.truncf %28 : vector<128x128xf32> to vector<128x128xbf16>
      %cst_23 = arith.constant dense<0.000000e+00> : vector<128x128xf32>
      %38 = tpu.matmul %37, %33, %cst_23 {dimension_numbers = #tpu.dot_dimension_numbers<[1], [0], [0], [1], [0, 0, 1, 1], [], []>} : vector<128x128xbf16>, vector<128x128xbf16>, vector<128x128xf32> -> vector<128x128xf32>
      %39 = vector.broadcast %36 : vector<1x128xf32> to vector<128x128xf32>
      %40 = arith.addf %38, %39 : vector<128x128xf32>
      %cst_24 = arith.constant 0.000000e+00 : f32
      %41 = vector.broadcast %cst_24 : f32 to vector<128x128xf32>
      %42 = arith.maximumf %40, %41 : vector<128x128xf32>
      %c3_i32_25 = arith.constant 3 : i32
      %43 = arith.muli %c3_i32_25, %arg0 : i32
      %c1_i32_26 = arith.constant 1 : i32
      %44 = arith.addi %43, %c1_i32_26 : i32
      %45 = arith.index_cast %44 : i32 to index
      %c0_27 = arith.constant 0 : index
      %c0_28 = arith.constant 0 : index
      %46 = vector.load %arg4[%45, %c0_27, %c0_28] : memref<7x128x128xbf16, #tpu.memory_space<vmem>>, vector<1x128x128xbf16>
      %47 = vector.shape_cast %46 : vector<1x128x128xbf16> to vector<128x128xbf16>
      %48 = arith.index_cast %44 : i32 to index
      %c0_29 = arith.constant 0 : index
      %c0_30 = arith.constant 0 : index
      %49 = vector.load %arg5[%48, %c0_29, %c0_30] : memref<8x1x128xf32, #tpu.memory_space<vmem>>, vector<1x1x128xf32>
      %50 = vector.shape_cast %49 : vector<1x1x128xf32> to vector<1x128xf32>
      %51 = arith.truncf %42 : vector<128x128xf32> to vector<128x128xbf16>
      %cst_31 = arith.constant dense<0.000000e+00> : vector<128x128xf32>
      %52 = tpu.matmul %51, %47, %cst_31 {dimension_numbers = #tpu.dot_dimension_numbers<[1], [0], [0], [1], [0, 0, 1, 1], [], []>} : vector<128x128xbf16>, vector<128x128xbf16>, vector<128x128xf32> -> vector<128x128xf32>
      %53 = vector.broadcast %50 : vector<1x128xf32> to vector<128x128xf32>
      %54 = arith.addf %52, %53 : vector<128x128xf32>
      %cst_32 = arith.constant 0.000000e+00 : f32
      %55 = vector.broadcast %cst_32 : f32 to vector<128x128xf32>
      %56 = arith.maximumf %54, %55 : vector<128x128xf32>
      %c3_i32_33 = arith.constant 3 : i32
      %57 = arith.muli %c3_i32_33, %arg0 : i32
      %c2_i32 = arith.constant 2 : i32
      %58 = arith.addi %57, %c2_i32 : i32
      %59 = arith.index_cast %58 : i32 to index
      %c0_34 = arith.constant 0 : index
      %c0_35 = arith.constant 0 : index
      %60 = vector.load %arg4[%59, %c0_34, %c0_35] : memref<7x128x128xbf16, #tpu.memory_space<vmem>>, vector<1x128x128xbf16>
      %61 = vector.shape_cast %60 : vector<1x128x128xbf16> to vector<128x128xbf16>
      %62 = arith.index_cast %58 : i32 to index
      %c0_36 = arith.constant 0 : index
      %c0_37 = arith.constant 0 : index
      %63 = vector.load %arg5[%62, %c0_36, %c0_37] : memref<8x1x128xf32, #tpu.memory_space<vmem>>, vector<1x1x128xf32>
      %64 = vector.shape_cast %63 : vector<1x1x128xf32> to vector<1x128xf32>
      %65 = arith.truncf %56 : vector<128x128xf32> to vector<128x128xbf16>
      %cst_38 = arith.constant dense<0.000000e+00> : vector<128x128xf32>
      %66 = tpu.matmul %65, %61, %cst_38 {dimension_numbers = #tpu.dot_dimension_numbers<[1], [0], [0], [1], [0, 0, 1, 1], [], []>} : vector<128x128xbf16>, vector<128x128xbf16>, vector<128x128xf32> -> vector<128x128xf32>
      %67 = vector.broadcast %64 : vector<1x128xf32> to vector<128x128xf32>
      %68 = arith.addf %66, %67 : vector<128x128xf32>
      %cst_39 = arith.constant 0.000000e+00 : f32
      %69 = vector.broadcast %cst_39 : f32 to vector<128x128xf32>
      %70 = arith.maximumf %68, %69 : vector<128x128xf32>
      %c0_40 = arith.constant 0 : index
      %c0_41 = arith.constant 0 : index
      %71 = vector.load %arg7[%c0_40, %c0_41] : memref<128x128xf32, #tpu.memory_space<vmem>>, vector<128x128xf32>
      tpu.vector_store %arg7[%c0_40, %c0_41], %70 {strides = array<i32>} : memref<128x128xf32, #tpu.memory_space<vmem>>, vector<128x128xf32>,
    } else {
    }
    %c1_i32 = arith.constant 1 : i32
    %21 = arith.cmpi eq, %arg0, %c1_i32 : i32
    %c0_i32_12 = arith.constant 0 : i32
    %22 = arith.cmpi eq, %arg1, %c0_i32_12 : i32
    %23 = arith.andi %21, %22 : i1
    %24 = arith.extui %23 : i1 to i32
    %c0_i32_13 = arith.constant 0 : i32
    %25 = arith.cmpi ne, %24, %c0_i32_13 : i32
    scf.if %25 {
      %c0_14 = arith.constant 0 : index
      %c0_15 = arith.constant 0 : index
      %26 = vector.load %arg7[%c0_14, %c0_15] : memref<128x128xf32, #tpu.memory_space<vmem>>, vector<128x128xf32>
      %27 = arith.truncf %26 : vector<128x128xf32> to vector<128x128xbf16>
      %c6 = arith.constant 6 : index
      %c0_16 = arith.constant 0 : index
      %c0_17 = arith.constant 0 : index
      %28 = vector.load %arg4[%c6, %c0_16, %c0_17] : memref<7x128x128xbf16, #tpu.memory_space<vmem>>, vector<1x128x128xbf16>
      %29 = vector.shape_cast %28 : vector<1x128x128xbf16> to vector<128x128xbf16>
      %cst_18 = arith.constant dense<0.000000e+00> : vector<128x128xf32>
      %30 = tpu.matmul %27, %29, %cst_18 {dimension_numbers = #tpu.dot_dimension_numbers<[1], [0], [0], [1], [0, 0, 1, 1], [], []>} : vector<128x128xbf16>, vector<128x128xbf16>, vector<128x128xf32> -> vector<128x128xf32>
      %c6_19 = arith.constant 6 : index
      %c0_20 = arith.constant 0 : index
      %c0_21 = arith.constant 0 : index
      %31 = vector.load %arg5[%c6_19, %c0_20, %c0_21] : memref<8x1x128xf32, #tpu.memory_space<vmem>>, vector<1x1x128xf32>
      %32 = vector.shape_cast %31 : vector<1x1x128xf32> to vector<1x128xf32>
      %33 = vector.broadcast %32 : vector<1x128xf32> to vector<128x128xf32>
      %34 = arith.addf %30, %33 : vector<128x128xf32>
      %cst_22 = arith.constant dense<0xFF800000> : vector<128xf32>
      %35 = vector.multi_reduction <maximumf>, %34, %cst_22 [1] : vector<128x128xf32> to vector<128xf32>
      %36 = vector.shape_cast %35 : vector<128xf32> to vector<128x1xf32>
      %37 = vector.broadcast %36 : vector<128x1xf32> to vector<128x128xf32>
      %38 = arith.subf %34, %37 : vector<128x128xf32>
      %39 = math.exp %38 : vector<128x128xf32>
      %cst_23 = arith.constant dense<0.000000e+00> : vector<128xf32>
      %40 = vector.multi_reduction <add>, %39, %cst_23 [1] : vector<128x128xf32> to vector<128xf32>
      %41 = vector.shape_cast %40 : vector<128xf32> to vector<128x1xf32>
      %42 = math.log %41 : vector<128x1xf32>
      %43 = arith.addf %42, %36 : vector<128x1xf32>
      %44 = vector.broadcast %43 : vector<128x1xf32> to vector<128x128xf32>
      %45 = arith.subf %34, %44 : vector<128x128xf32>
      %c0_24 = arith.constant 0 : index
      %c0_25 = arith.constant 0 : index
      %46 = vector.load %arg6[%c0_24, %c0_25] : memref<128x128xf32, #tpu.memory_space<vmem>>, vector<128x128xf32>
      tpu.vector_store %arg6[%c0_24, %c0_25], %45 {strides = array<i32>} : memref<128x128xf32, #tpu.memory_space<vmem>>, vector<128x128xf32>,
    } else {
    }
    return
  }
  func.func @transform_0(%arg0: i32, %arg1: i32) -> (i32, i32) {
    %c0_i32 = arith.constant 0 : i32
    %c0_i32_0 = arith.constant 0 : i32
    %c0_i32_1 = arith.constant 0 : i32
    return %c0_i32, %c0_i32_0 : i32, i32
  }
  func.func @transform_1(%arg0: i32, %arg1: i32) -> (i32, i32) {
    %c0_i32 = arith.constant 0 : i32
    %c0_i32_0 = arith.constant 0 : i32
    return %c0_i32, %arg1 : i32, i32
  }
  func.func @transform_2(%arg0: i32, %arg1: i32) -> (i32, i32, i32) {
    %c0_i32 = arith.constant 0 : i32
    %c0_i32_0 = arith.constant 0 : i32
    %c0_i32_1 = arith.constant 0 : i32
    %c0_i32_2 = arith.constant 0 : i32
    return %c0_i32, %c0_i32_0, %c0_i32_1 : i32, i32, i32
  }
  func.func @transform_3(%arg0: i32, %arg1: i32) -> (i32, i32, i32) {
    %c0_i32 = arith.constant 0 : i32
    %c0_i32_0 = arith.constant 0 : i32
    %c0_i32_1 = arith.constant 0 : i32
    %c0_i32_2 = arith.constant 0 : i32
    return %c0_i32, %c0_i32_0, %c0_i32_1 : i32, i32, i32
  }
  func.func @transform_4(%arg0: i32, %arg1: i32) -> (i32, i32) {
    %c0_i32 = arith.constant 0 : i32
    %c0_i32_0 = arith.constant 0 : i32
    %c0_i32_1 = arith.constant 0 : i32
    return %c0_i32, %c0_i32_0 : i32, i32
  }
}

</mosaic_0001>

<bundles_post_ra>
// kernel: gin_net_forward.1
= control target key start
LH: loop header
LB: loop body
LE: loop exit
PB: predicated region body
PF: predicated region fallthrough
CT: control target
= control target key end

     0   :  { %s2137_s15 = smov 0   ;;  %s2139_s16 = smov 0   ;;  %s2556_s0 = inlined_call_operand.vmem [shape: f32[128,128], index: 0, kind: input, shape index: {}]   ;;  %s2557_s1 = inlined_call_operand.vmem [shape: bf16[128,128], index: 1, kind: input, shape index: {}]   ;;  %s2558_s2 = inlined_call_operand.vmem [shape: bf16[7,128,128], index: 2, kind: input, shape index: {}]   ;;  %s2559_s3 = inlined_call_operand.vmem [shape: f32[8,1,128], index: 3, kind: input, shape index: {}]   ;;  %s2560_s4 = inlined_call_operand.vmem [shape: f32[128,128], index: 4, kind: output, shape index: {}]  }
   0x1   :  { %s2141_s17 = smov 0  }
   0x2 LB: > { %s26_s18 = sadd.s32 1, %s2106_s16  ;;  %p1597_p0 = scmp.ge.s32.totalorder %s2110_s17, 1  ;;  %s2110_s17 = sphi %s2141_s17, %s14_s17   ;;  %s2106_s16 = sphi %s2139_s16, %s2562_s16   ;;  %s2102_s15 = sphi %s2137_s15, %s2561_s15  }
   0x3   : > { %p28_p1 = scmp.ge.s32.totalorder %s26_s18, 2  ;;  %p168_p2 = scmp.lt.s32.totalorder %s2110_s17, 3 }
   0x5   : > { %s2564_s18 = smov (%p28_p1, %s26_s18), 0  ;;  %p169_p3 = pnand %p1597_p0, %p168_p2 }
   0x6   : > { %p193_p4 = scmp.eq.s32.totalorder (!%p169_p3), %s2102_s15, 0 }
   0x7   : > { %172 = sbr.rel (%p169_p3) target bundleno = 1450 (0x5aa), region = 36 }
   0xc   : > { %198 = sbr.rel (!%p193_p4) target bundleno = 21 (0x15), region = 40  ;;  %v199_v0 = vld [vmem:[%s2556_s0] sm:$0xff] (%p193_p4)  ;;  %v200_v1 = vld [vmem:[%s2556_s0 + $0x8] sm:$0xff] (%p193_p4)  ;;  %v201_v2 = vld [vmem:[%s2556_s0 + $0x10] sm:$0xff] (%p193_p4) }
   0xd   : > { %215 = vst [vmem:[#allocation2 + $0x30] sm:$0xff] (%p193_p4), %v199_v0  ;;  %216 = vst [vmem:[#allocation2] sm:$0xff] (%p193_p4), %v200_v1  ;;  %v202_v3 = vld [vmem:[%s2556_s0 + $0x18] sm:$0xff] (%p193_p4)  ;;  %v203_v4 = vld [vmem:[%s2556_s0 + $0x20] sm:$0xff] (%p193_p4) }
   0xe   : > { %217 = vst [vmem:[#allocation2 + $0x58] sm:$0xff] (%p193_p4), %v201_v2  ;;  %v204_v5 = vld [vmem:[%s2556_s0 + $0x28] sm:$0xff] (%p193_p4)  ;;  %218 = vst [vmem:[#allocation2 + $0x18] sm:$0xff] (%p193_p4), %v202_v3  ;;  %v205_v6 = vld [vmem:[%s2556_s0 + $0x30] sm:$0xff] (%p193_p4) }
   0xf   : > { %219 = vst [vmem:[#allocation2 + $0x50] sm:$0xff] (%p193_p4), %v203_v4  ;;  %220 = vst [vmem:[#allocation2 + $0x68] sm:$0xff] (%p193_p4), %v204_v5  ;;  %v206_v7 = vld [vmem:[%s2556_s0 + $0x38] sm:$0xff] (%p193_p4)  ;;  %v207_v8 = vld [vmem:[%s2556_s0 + $0x40] sm:$0xff] (%p193_p4) }
  0x10   : > { %221 = vst [vmem:[#allocation2 + $0x8] sm:$0xff] (%p193_p4), %v205_v6  ;;  %222 = vst [vmem:[#allocation2 + $0x48] sm:$0xff] (%p193_p4), %v206_v7  ;;  %v208_v9 = vld [vmem:[%s2556_s0 + $0x48] sm:$0xff] (%p193_p4)  ;;  %v209_v10 = vld [vmem:[%s2556_s0 + $0x50] sm:$0xff] (%p193_p4) }
  0x11   : > { %223 = vst [vmem:[#allocation2 + $0x40] sm:$0xff] %v207_v8  ;;  %v210_v11 = vld [vmem:[%s2556_s0 + $0x58] sm:$0xff]  ;;  %224 = vst [vmem:[#allocation2 + $0x20] sm:$0xff] %v208_v9  ;;  %v211_v12 = vld [vmem:[%s2556_s0 + $0x60] sm:$0xff] }
  0x12   : > { %225 = vst [vmem:[#allocation2 + $0x10] sm:$0xff] %v209_v10  ;;  %226 = vst [vmem:[#allocation2 + $0x38] sm:$0xff] %v210_v11  ;;  %v212_v13 = vld [vmem:[%s2556_s0 + $0x68] sm:$0xff]  ;;  %v213_v14 = vld [vmem:[%s2556_s0 + $0x70] sm:$0xff] }
  0x13   : > { %227 = vst [vmem:[#allocation2 + $0x60] sm:$0xff] %v211_v12  ;;  %228 = vst [vmem:[#allocation2 + $0x70] sm:$0xff] %v212_v13  ;;  %v214_v15 = vld [vmem:[%s2556_s0 + $0x78] sm:$0xff] }
  0x14   : > { %229 = vst [vmem:[#allocation2 + $0x78] sm:$0xff] %v213_v14  ;;  %230 = vst [vmem:[#allocation2 + $0x28] sm:$0xff] %v214_v15 }
  0x15 PF: > { %v1984_v27 = vld [vmem:[%s2557_s1] sm:$0xff]   ;;  %s1702_s5 = smul.u32 192, %s2102_s15  ;;  %v1985_v46 = vld [vmem:[%s2557_s1 + $0x8] sm:$0xff]   ;;  %v1986_v47 = vld [vmem:[%s2557_s1 + $0x10] sm:$0xff]   ;;  %p1143_p5 = scmp.eq.s32.totalorder %s2102_s15, 1 }
  0x16   : > { %1800 = vmatprep.mubr.bf16.mxu0 %v1984_v27  ;;  %v1987_v48 = vld [vmem:[%s2557_s1 + $0x18] sm:$0xff]   ;;  %v1988_v49 = vld [vmem:[%s2557_s1 + $0x20] sm:$0xff]   ;;  %v1989_v50 = vld [vmem:[%s2557_s1 + $0x28] sm:$0xff]   ;;  %s536_s27 = smul.u32 3, %s2102_s15 }
  0x17   : > { %s2241_s8 = scalar_lea.vmem %s2558_s2, %s1702_s5  ;;  %v1990_v51 = vld [vmem:[%s2557_s1 + $0x30] sm:$0xff]   ;;  %v1991_v52 = vld [vmem:[%s2557_s1 + $0x38] sm:$0xff]  }
  0x18   : > { %v1992_v34 = vld [vmem:[%s2241_s8 + $0x38] sm:$0xff]   ;;  %v1993_v35 = vld [vmem:[%s2241_s8 + $0x30] sm:$0xff]   ;;  %v1994_v39 = vld [vmem:[%s2241_s8 + $0x28] sm:$0xff]   ;;  %s2317_s30 = scalar_lea.vmem %s2559_s3, %s536_s27 }
  0x19   : > { %v2218_v22 = vld [vmem:[#allocation2 + $0x10] sm:$0xff]  ;;  %v2220_v23 = vld [vmem:[#allocation2 + $0x38] sm:$0xff]  ;;  %1816 = vmatprep.subr.bf16.mxu1 %v1992_v34  ;;  %v253_v41 = vld [vmem:[#allocation2] sm:$0xff] }
  0x1a   : > { %v2210_v18 = vld [vmem:[#allocation2 + $0x60] sm:$0xff]  ;;  %v2214_v20 = vld [vmem:[#allocation2 + $0x70] sm:$0xff]  ;;  %v273_v25 = vpack.c.bf16 %v2220_v23, %v2218_v22  ;;  %v2247_v33 = vld [vmem:[#allocation2 + $0x68] sm:$0xff]  ;;  %1817 = vmatpush3.bf16.msra.mxu1 %v1992_v34 }
  0x1b   : > { %v2206_v16 = vld [vmem:[#allocation2 + $0x78] sm:$0xff]  ;;  %v2208_v17 = vld [vmem:[#allocation2 + $0x28] sm:$0xff]  ;;  %v274_v21 = vpack.c.bf16 %v2214_v20, %v2210_v18  ;;  %v2243_v31 = vld [vmem:[#allocation2 + $0x50] sm:$0xff]  ;;  %1818 = vmatprep.subr.bf16.mxu1 %v1993_v35 }
  0x1c   : > { %v275_v19 = vpack.c.bf16 %v2208_v17, %v2206_v16  ;;  %v2222_v24 = vld [vmem:[#allocation2 + $0x40] sm:$0xff]  ;;  %v2234_v29 = vld [vmem:[#allocation2 + $0x8] sm:$0xff]  ;;  %v2251_v36 = vld [vmem:[#allocation2 + $0x58] sm:$0xff]  ;;  %v270_v37 = vpack.c.bf16 %v2247_v33, %v2243_v31 }
  0x1d   : > { %v2226_v26 = vld [vmem:[#allocation2 + $0x20] sm:$0xff]  ;;  %v2236_v30 = vld [vmem:[#allocation2 + $0x48] sm:$0xff]  ;;  %v2255_v38 = vld [vmem:[#allocation2 + $0x18] sm:$0xff] }
  0x1e   : > { %1784 = vmatprep.subr.bf16.mxu0 %v275_v19  ;;  %v272_v28 = vpack.c.bf16 %v2226_v26, %v2222_v24  ;;  %v271_v32 = vpack.c.bf16 %v2236_v30, %v2234_v29  ;;  %v252_v40 = vld [vmem:[#allocation2 + $0x30] sm:$0xff]  ;;  %v1995_v42 = vld [vmem:[%s2241_s8 + $0x20] sm:$0xff]   ;;  %v269_v43 = vpack.c.bf16 %v2255_v38, %v2251_v36  ;;  %1819 = vmatpush3.bf16.msra.mxu1 %v1993_v35  ;;  %v1996_v44 = vld [vmem:[%s2241_s8 + $0x18] sm:$0xff]  }
  0x1f   : > { %1785 = vmatpush3.bf16.msra.mxu0 %v275_v19  ;;  %1820 = vmatprep.subr.bf16.mxu1 %v1994_v39  ;;  %v268_v45 = vpack.c.bf16 %v253_v41, %v252_v40  ;;  %v1997_v53 = vld [vmem:[%s2241_s8 + $0x10] sm:$0xff]   ;;  %v1998_v54 = vld [vmem:[%s2241_s8 + $0x8] sm:$0xff]   ;;  %v1999_v55 = vld [vmem:[%s2241_s8] sm:$0xff]  }
  0x20   : > { %1786 = vmatprep.subr.bf16.mxu0 %v274_v21  ;;  %v2000_v56 = vld [vmem:[%s2241_s8 + $0x78] sm:$0xff]   ;;  %v2001_v57 = vld [vmem:[%s2241_s8 + $0x70] sm:$0xff]   ;;  %v2002_v58 = vld [vmem:[%s2241_s8 + $0x68] sm:$0xff]  }
  0x21   : > { %v2003_v59 = vld [vmem:[%s2241_s8 + $0x60] sm:$0xff]   ;;  %v2004_v60 = vld [vmem:[%s2241_s8 + $0x58] sm:$0xff]  }
  0x22   : > { %1821 = vmatpush3.bf16.msra.mxu1 %v1994_v39 }
  0x23   : > { %1787 = vmatpush3.bf16.msra.mxu0 %v274_v21  ;;  %1822 = vmatprep.subr.bf16.mxu1 %v1995_v42 }
  0x24   : > { %1788 = vmatprep.subr.bf16.mxu0 %v273_v25 }
  0x26   : > { %1823 = vmatpush3.bf16.msra.mxu1 %v1995_v42  ;;  %v2006_v42 = vld [vmem:[%s2241_s8 + $0x48] sm:$0xff]  }
  0x27   : > { %1789 = vmatpush3.bf16.msra.mxu0 %v273_v25  ;;  %1824 = vmatprep.subr.bf16.mxu1 %v1996_v44 }
  0x28   : > { %1790 = vmatprep.subr.bf16.mxu0 %v272_v28 }
  0x2a   : > { %1825 = vmatpush3.bf16.msra.mxu1 %v1996_v44  ;;  %v2012_v44 = vld [vmem:[%s2241_s8 + $0x98] sm:$0xff]  }
  0x2b   : > { %1791 = vmatpush3.bf16.msra.mxu0 %v272_v28  ;;  %1826 = vmatprep.subr.bf16.mxu1 %v1997_v53 }
  0x2c   : > { %1792 = vmatprep.subr.bf16.mxu0 %v271_v32 }
  0x2e   : > { %1827 = vmatpush3.bf16.msra.mxu1 %v1997_v53 }
  0x2f   : > { %1793 = vmatpush3.bf16.msra.mxu0 %v271_v32  ;;  %1828 = vmatprep.subr.bf16.mxu1 %v1998_v54 }
  0x30   : > { %1794 = vmatprep.subr.bf16.mxu0 %v270_v37 }
  0x32   : > { %1829 = vmatpush3.bf16.msra.mxu1 %v1998_v54 }
  0x33   : > { %1795 = vmatpush3.bf16.msra.mxu0 %v270_v37  ;;  %1830 = vmatprep.subr.bf16.mxu1 %v1999_v55 }
  0x34   : > { %1796 = vmatprep.subr.bf16.mxu0 %v269_v43 }
  0x36   : > { %1831 = vmatpush3.bf16.msra.mxu1 %v1999_v55 }
  0x37   : > { %1797 = vmatpush3.bf16.msra.mxu0 %v269_v43  ;;  %v2011_v43 = vld [vmem:[%s2241_s8 + $0xa0] sm:$0xff]  }
  0x38   : > { %1798 = vmatprep.subr.bf16.mxu0 %v268_v45 }
  0x3b   : > { %1799 = vmatpush3.bf16.msra.mxu0 %v268_v45 }
  0x3c   : > { %1848 = vmatprep.subr.bf16.mxu0 %v2000_v56 }
  0x3e   : > { %1801 = vmatmul.mubr.bf16.vlgmr.msra.gmra.mxu0 %v1985_v46 }
  0x3f   : > { %1804 = vmatprep.mubr.bf16.mxu0 %v1986_v47  ;;  %1849 = vmatpush3.bf16.msra.mxu0 %v2000_v56  ;;  %v1609_v47 = vld [vmem:[%s2317_s30] ss:$0 sm:$0xff] }
  0x40   : > { %1850 = vmatprep.subr.bf16.mxu0 %v2001_v57 }
  0x43   : > { %1851 = vmatpush3.bf16.msra.mxu0 %v2001_v57 }
  0x44   : > { %1852 = vmatprep.subr.bf16.mxu0 %v2002_v58 }
  0x46   : > { %1805 = vmatmul.mubr.bf16.gmra.mxu0 %v1987_v48 }
  0x47   : > { %1808 = vmatprep.mubr.bf16.mxu0 %v1988_v49  ;;  %1853 = vmatpush3.bf16.msra.mxu0 %v2002_v58 }
  0x48   : > { %1854 = vmatprep.subr.bf16.mxu0 %v2003_v59 }
  0x4b   : > { %1855 = vmatpush3.bf16.msra.mxu0 %v2003_v59 }
  0x4c   : > { %1856 = vmatprep.subr.bf16.mxu0 %v2004_v60 }
  0x4e   : > { %1809 = vmatmul.mubr.bf16.gmra.mxu0 %v1989_v50 }
  0x4f   : > { %1812 = vmatprep.mubr.bf16.mxu0 %v1990_v51  ;;  %1857 = vmatpush3.bf16.msra.mxu0 %v2004_v60 }
  0x56   : > { %1813 = vmatmul.mubr.bf16.gmra.mxu0 %v1991_v52 }
  0xfe   : > { %v1802_v61 = vpop.f32.mrf.mxu0 }
  0xff   : > { %v522_v4 = vadd.f32 %v1802_v61, %v2251_v36 }
 0x100   : > { %v390_v62 = vpop.f32.mrf.mxu0 }
 0x101   : > { %v520_v2 = vadd.f32 %v390_v62, %v252_v40 }
 0x102   : > { %v1803_v63 = vpop.f32.mrf.mxu0 }
 0x103   : > { %v523_v0 = vadd.f32 %v1803_v63, %v2255_v38 }
 0x104   : > { %v393_v1 = vpop.f32.mrf.mxu0 }
 0x105   : > { %v521_v3 = vadd.f32 %v393_v1, %v253_v41  ;;  %v559_v7 = vpack.c.bf16 %v523_v0, %v522_v4  ;;  %v2005_v41 = vld [vmem:[%s2241_s8 + $0x50] sm:$0xff]  }
 0x106   : > { %v1806_v5 = vpop.f32.mrf.mxu0  ;;  %1858 = vmatprep.subr.bf16.mxu0 %v2005_v41 }
 0x107   : > { %v558_v6 = vpack.c.bf16 %v521_v3, %v520_v2  ;;  %v526_v14 = vadd.f32 %v1806_v5, %v2234_v29  ;;  %1859 = vmatpush3.bf16.msra.mxu0 %v2005_v41 }
 0x108   : > { %v406_v8 = vpop.f32.mrf.mxu0  ;;  %1860 = vmatprep.subr.bf16.mxu0 %v2006_v42 }
 0x109   : > { %1832 = vmatprep.mubr.bf16.mxu1 %v558_v6  ;;  %v524_v12 = vadd.f32 %v406_v8, %v2243_v31 }
 0x10a   : > { %v1807_v9 = vpop.f32.mrf.mxu0  ;;  %1833 = vmatmul.mubr.bf16.vlgmr.msra.gmra.mxu1 %v559_v7 }
 0x10b   : > { %v527_v10 = vadd.f32 %v1807_v9, %v2236_v30  ;;  %1861 = vmatpush3.bf16.msra.mxu0 %v2006_v42  ;;  %v2013_v42 = vld [vmem:[%s2241_s8 + $0x90] sm:$0xff]  }
 0x10c   : > { %v409_v11 = vpop.f32.mrf.mxu0 }
 0x10d   : > { %v525_v13 = vadd.f32 %v409_v11, %v2247_v33  ;;  %v561_v21 = vpack.c.bf16 %v527_v10, %v526_v14 }
 0x10e   : > { %v1810_v15 = vpop.f32.mrf.mxu0 }
 0x10f   : > { %v560_v19 = vpack.c.bf16 %v525_v13, %v524_v12  ;;  %v530_v31 = vadd.f32 %v1810_v15, %v2218_v22 }
 0x110   : > { %v422_v25 = vpop.f32.mrf.mxu0 }
 0x111   : > { %1836 = vmatprep.mubr.bf16.mxu1 %v560_v19  ;;  %v528_v34 = vadd.f32 %v422_v25, %v2222_v24 }
 0x112   : > { %v1811_v27 = vpop.f32.mrf.mxu0  ;;  %1837 = vmatmul.mubr.bf16.gmra.mxu1 %v561_v21 }
 0x113   : > { %v531_v28 = vadd.f32 %v1811_v27, %v2220_v23 }
 0x114   : > { %v425_v32 = vpop.f32.mrf.mxu0 }
 0x115   : > { %v529_v30 = vadd.f32 %v425_v32, %v2226_v26  ;;  %v563_v29 = vpack.c.bf16 %v531_v28, %v530_v31 }
 0x116   : > { %v1814_v35 = vpop.f32.mrf.mxu0 }
 0x117   : > { %v562_v33 = vpack.c.bf16 %v529_v30, %v528_v34  ;;  %v534_v22 = vadd.f32 %v1814_v35, %v2206_v16  ;;  %v2010_v16 = vld [vmem:[%s2241_s8 + $0xa8] sm:$0xff]  }
 0x118   : > { %v438_v36 = vpop.f32.mrf.mxu0 }
 0x119   : > { %1840 = vmatprep.mubr.bf16.mxu1 %v562_v33  ;;  %v532_v39 = vadd.f32 %v438_v36, %v2210_v18  ;;  %v2008_v18 = vld [vmem:[%s2241_s8 + $0xb8] sm:$0xff]  }
 0x11a   : > { %v1815_v37 = vpop.f32.mrf.mxu0  ;;  %1841 = vmatmul.mubr.bf16.gmra.mxu1 %v563_v29  ;;  %1880 = vmatprep.subr.bf16.mxu1 %v2008_v18 }
 0x11b   : > { %v535_v38 = vadd.f32 %v1815_v37, %v2208_v17  ;;  %v2007_v17 = vld [vmem:[%s2241_s8 + $0x40] sm:$0xff]   ;;  %1881 = vmatpush3.bf16.msra.mxu1 %v2008_v18 }
 0x11c   : > { %v441_v23 = vpop.f32.mrf.mxu0  ;;  %1862 = vmatprep.subr.bf16.mxu0 %v2007_v17  ;;  %v2015_v18 = vld [vmem:[%s2241_s8 + $0x80] sm:$0xff]  }
 0x11d   : > { %v533_v24 = vadd.f32 %v441_v23, %v2214_v20  ;;  %v565_v40 = vpack.c.bf16 %v535_v38, %v534_v22  ;;  %1863 = vmatpush3.bf16.msra.mxu0 %v2007_v17  ;;  %v2009_v20 = vld [vmem:[%s2241_s8 + $0xb0] sm:$0xff]   ;;  %v2014_v17 = vld [vmem:[%s2241_s8 + $0x88] sm:$0xff]  }
 0x11e   : > { %1882 = vmatprep.subr.bf16.mxu1 %v2009_v20 }
 0x11f   : > { %v564_v26 = vpack.c.bf16 %v533_v24, %v532_v39  ;;  %1883 = vmatpush3.bf16.msra.mxu1 %v2009_v20 }
 0x120   : > { %1884 = vmatprep.subr.bf16.mxu1 %v2010_v16 }
 0x121   : > { %1844 = vmatprep.mubr.bf16.mxu1 %v564_v26 }
 0x122   : > { %1845 = vmatmul.mubr.bf16.gmra.mxu1 %v565_v40 }
 0x123   : > { %1885 = vmatpush3.bf16.msra.mxu1 %v2010_v16 }
 0x124   : > { %1886 = vmatprep.subr.bf16.mxu1 %v2011_v43 }
 0x127   : > { %1887 = vmatpush3.bf16.msra.mxu1 %v2011_v43  ;;  %v1636_v43 = vld [vmem:[%s2317_s30 + $0x1] ss:$0 sm:$0xff] }
 0x128   : > { %1888 = vmatprep.subr.bf16.mxu1 %v2012_v44 }
 0x12b   : > { %1889 = vmatpush3.bf16.msra.mxu1 %v2012_v44 }
 0x12c   : > { %1890 = vmatprep.subr.bf16.mxu1 %v2013_v42 }
 0x12f   : > { %1891 = vmatpush3.bf16.msra.mxu1 %v2013_v42 }
 0x130   : > { %1892 = vmatprep.subr.bf16.mxu1 %v2014_v17 }
 0x133   : > { %1893 = vmatpush3.bf16.msra.mxu1 %v2014_v17 }
 0x134   : > { %1894 = vmatprep.subr.bf16.mxu1 %v2015_v18 }
 0x137   : > { %1895 = vmatpush3.bf16.msra.mxu1 %v2015_v18 }
 0x1ca   : > { %v1834_v45 = vpop.f32.mrf.mxu1 }
 0x1cb   : > { %v663_v51 = vadd.f32 %v1834_v45, %v1609_v47 }
 0x1cc   : > { %v654_v46 = vpop.f32.mrf.mxu1 }
 0x1cd   : > { %v655_v49 = vadd.f32 %v1609_v47, %v654_v46  ;;  %v719_v58 = vmax.f32 %v663_v51, 0.0 }
 0x1ce   : > { %v1835_v48 = vpop.f32.mrf.mxu1 }
 0x1cf   : > { %v666_v50 = vadd.f32 %v1835_v48, %v1609_v47  ;;  %v717_v56 = vmax.f32 %v655_v49, 0.0 }
 0x1d0   : > { %v657_v52 = vpop.f32.mrf.mxu1 }
 0x1d1   : > { %v658_v53 = vadd.f32 %v1609_v47, %v657_v52  ;;  %v720_v54 = vmax.f32 %v666_v50, 0.0 }
 0x1d2   : > { %v1838_v55 = vpop.f32.mrf.mxu1 }
 0x1d3   : > { %v718_v57 = vmax.f32 %v658_v53, 0.0  ;;  %v756_v61 = vpack.c.bf16 %v720_v54, %v719_v58  ;;  %v679_v1 = vadd.f32 %v1838_v55, %v1609_v47 }
 0x1d4   : > { %v670_v59 = vpop.f32.mrf.mxu1 }
 0x1d5   : > { %v755_v60 = vpack.c.bf16 %v718_v57, %v717_v56  ;;  %v671_v63 = vadd.f32 %v1609_v47, %v670_v59  ;;  %v723_v8 = vmax.f32 %v679_v1, 0.0 }
 0x1d6   : > { %v1839_v62 = vpop.f32.mrf.mxu1 }
 0x1d7   : > { %v682_v0 = vadd.f32 %v1839_v62, %v1609_v47  ;;  %1864 = vmatprep.mubr.bf16.mxu0 %v755_v60  ;;  %v721_v6 = vmax.f32 %v671_v63, 0.0 }
 0x1d8   : > { %v673_v2 = vpop.f32.mrf.mxu1  ;;  %1865 = vmatmul.mubr.bf16.vlgmr.msra.gmra.mxu0 %v756_v61 }
 0x1d9   : > { %v674_v3 = vadd.f32 %v1609_v47, %v673_v2  ;;  %v724_v4 = vmax.f32 %v682_v0, 0.0 }
 0x1da   : > { %v1842_v5 = vpop.f32.mrf.mxu1 }
 0x1db   : > { %v722_v7 = vmax.f32 %v674_v3, 0.0  ;;  %v758_v11 = vpack.c.bf16 %v724_v4, %v723_v8  ;;  %v695_v15 = vadd.f32 %v1842_v5, %v1609_v47 }
 0x1dc   : > { %v686_v9 = vpop.f32.mrf.mxu1 }
 0x1dd   : > { %v757_v10 = vpack.c.bf16 %v722_v7, %v721_v6  ;;  %v687_v13 = vadd.f32 %v1609_v47, %v686_v9  ;;  %v727_v34 = vmax.f32 %v695_v15, 0.0 }
 0x1de   : > { %v1843_v12 = vpop.f32.mrf.mxu1 }
 0x1df   : > { %v698_v14 = vadd.f32 %v1843_v12, %v1609_v47  ;;  %1868 = vmatprep.mubr.bf16.mxu0 %v757_v10  ;;  %v725_v28 = vmax.f32 %v687_v13, 0.0 }
 0x1e0   : > { %v689_v19 = vpop.f32.mrf.mxu1  ;;  %1869 = vmatmul.mubr.bf16.gmra.mxu0 %v758_v11 }
 0x1e1   : > { %v690_v21 = vadd.f32 %v1609_v47, %v689_v19  ;;  %v728_v25 = vmax.f32 %v698_v14, 0.0 }
 0x1e2   : > { %v1846_v27 = vpop.f32.mrf.mxu1 }
 0x1e3   : > { %v726_v32 = vmax.f32 %v690_v21, 0.0  ;;  %v760_v35 = vpack.c.bf16 %v728_v25, %v727_v34  ;;  %v711_v37 = vadd.f32 %v1846_v27, %v1609_v47 }
 0x1e4   : > { %v702_v30 = vpop.f32.mrf.mxu1 }
 0x1e5   : > { %v759_v31 = vpack.c.bf16 %v726_v32, %v725_v28  ;;  %v703_v29 = vadd.f32 %v1609_v47, %v702_v30  ;;  %v731_v26 = vmax.f32 %v711_v37, 0.0 }
 0x1e6   : > { %v1847_v33 = vpop.f32.mrf.mxu1 }
 0x1e7   : > { %v714_v36 = vadd.f32 %v1847_v33, %v1609_v47  ;;  %1872 = vmatprep.mubr.bf16.mxu0 %v759_v31  ;;  %v729_v24 = vmax.f32 %v703_v29, 0.0 }
 0x1e8   : > { %v705_v38 = vpop.f32.mrf.mxu1  ;;  %1873 = vmatmul.mubr.bf16.gmra.mxu0 %v760_v35 }
 0x1e9   : > { %v706_v23 = vadd.f32 %v1609_v47, %v705_v38  ;;  %v732_v39 = vmax.f32 %v714_v36, 0.0 }
 0x1eb   : > { %v730_v22 = vmax.f32 %v706_v23, 0.0  ;;  %v762_v41 = vpack.c.bf16 %v732_v39, %v731_v26 }
 0x1ed   : > { %v761_v40 = vpack.c.bf16 %v730_v22, %v729_v24  ;;  %v1663_v22 = vld [vmem:[%s2317_s30 + $0x2] ss:$0 sm:$0xff] }
 0x1ef   : > { %1876 = vmatprep.mubr.bf16.mxu0 %v761_v40 }
 0x1f0   : > { %1877 = vmatmul.mubr.bf16.gmra.mxu0 %v762_v41 }
 0x298   : > { %v1866_v20 = vpop.f32.mrf.mxu0 }
 0x299   : > { %v860_v47 = vadd.f32 %v1866_v20, %v1636_v43 }
 0x29a   : > { %v851_v16 = vpop.f32.mrf.mxu0 }
 0x29b   : > { %v852_v45 = vadd.f32 %v1636_v43, %v851_v16  ;;  %v916_v54 = vmax.f32 %v860_v47, 0.0 }
 0x29c   : > { %v1867_v44 = vpop.f32.mrf.mxu0 }
 0x29d   : > { %v863_v46 = vadd.f32 %v1867_v44, %v1636_v43  ;;  %v914_v52 = vmax.f32 %v852_v45, 0.0 }
 0x29e   : > { %v854_v48 = vpop.f32.mrf.mxu0 }
 0x29f   : > { %v855_v49 = vadd.f32 %v1636_v43, %v854_v48  ;;  %v917_v50 = vmax.f32 %v863_v46, 0.0 }
 0x2a0   : > { %v1870_v51 = vpop.f32.mrf.mxu0 }
 0x2a1   : > { %v915_v53 = vmax.f32 %v855_v49, 0.0  ;;  %v953_v57 = vpack.c.bf16 %v917_v50, %v916_v54  ;;  %v876_v61 = vadd.f32 %v1870_v51, %v1636_v43 }
 0x2a2   : > { %v867_v55 = vpop.f32.mrf.mxu0 }
 0x2a3   : > { %v952_v56 = vpack.c.bf16 %v915_v53, %v914_v52  ;;  %v868_v59 = vadd.f32 %v1636_v43, %v867_v55  ;;  %v920_v4 = vmax.f32 %v876_v61, 0.0 }
 0x2a4   : > { %v1871_v58 = vpop.f32.mrf.mxu0 }
 0x2a5   : > { %v879_v60 = vadd.f32 %v1871_v58, %v1636_v43  ;;  %1896 = vmatprep.mubr.bf16.mxu1 %v952_v56  ;;  %v918_v2 = vmax.f32 %v868_v59, 0.0 }
 0x2a6   : > { %v870_v62 = vpop.f32.mrf.mxu0  ;;  %1897 = vmatmul.mubr.bf16.vlgmr.msra.gmra.mxu1 %v953_v57 }
 0x2a7   : > { %v871_v63 = vadd.f32 %v1636_v43, %v870_v62  ;;  %v921_v0 = vmax.f32 %v879_v60, 0.0 }
 0x2a8   : > { %v1874_v1 = vpop.f32.mrf.mxu0 }
 0x2a9   : > { %v919_v3 = vmax.f32 %v871_v63, 0.0  ;;  %v955_v7 = vpack.c.bf16 %v921_v0, %v920_v4  ;;  %v892_v11 = vadd.f32 %v1874_v1, %v1636_v43 }
 0x2aa   : > { %v883_v5 = vpop.f32.mrf.mxu0 }
 0x2ab   : > { %v954_v6 = vpack.c.bf16 %v919_v3, %v918_v2  ;;  %v884_v9 = vadd.f32 %v1636_v43, %v883_v5  ;;  %v924_v25 = vmax.f32 %v892_v11, 0.0 }
 0x2ac   : > { %v1875_v8 = vpop.f32.mrf.mxu0 }
 0x2ad   : > { %v895_v10 = vadd.f32 %v1875_v8, %v1636_v43  ;;  %1900 = vmatprep.mubr.bf16.mxu1 %v954_v6  ;;  %v922_v19 = vmax.f32 %v884_v9, 0.0 }
 0x2ae   : > { %v886_v12 = vpop.f32.mrf.mxu0  ;;  %1901 = vmatmul.mubr.bf16.gmra.mxu1 %v955_v7 }
 0x2af   : > { %v887_v13 = vadd.f32 %v1636_v43, %v886_v12  ;;  %v925_v14 = vmax.f32 %v895_v10, 0.0 }
 0x2b0   : > { %v1878_v15 = vpop.f32.mrf.mxu0 }
 0x2b1   : > { %v923_v21 = vmax.f32 %v887_v13, 0.0  ;;  %v957_v32 = vpack.c.bf16 %v925_v14, %v924_v25  ;;  %v908_v35 = vadd.f32 %v1878_v15, %v1636_v43 }
 0x2b2   : > { %v899_v27 = vpop.f32.mrf.mxu0 }
 0x2b3   : > { %v956_v28 = vpack.c.bf16 %v923_v21, %v922_v19  ;;  %v900_v30 = vadd.f32 %v1636_v43, %v899_v27  ;;  %v928_v23 = vmax.f32 %v908_v35, 0.0  ;;  %v2016_v27 = vld [vmem:[%s2558_s2 + $0x1b8] sm:$0xff] (%p1143_p5)  }
 0x2b4   : > { %v1879_v34 = vpop.f32.mrf.mxu0  ;;  %1912 = vmatprep.subr.bf16.mxu0 (%p1143_p5), %v2016_v27  ;;  %1944 = vmatprep.subr.bf16.mxu1 (%p1143_p5), %v2016_v27 }
 0x2b5   : > { %v911_v31 = vadd.f32 %v1879_v34, %v1636_v43  ;;  %1904 = vmatprep.mubr.bf16.mxu1 %v956_v28  ;;  %v926_v37 = vmax.f32 %v900_v30, 0.0  ;;  %v2017_v28 = vld [vmem:[%s2558_s2 + $0x1b0] sm:$0xff] (%p1143_p5)   ;;  %1913 = vmatpush3.bf16.msra.mxu0 (%p1143_p5), %v2016_v27  ;;  %v2019_v34 = vld [vmem:[%s2558_s2 + $0x1a0] sm:$0xff] (%p1143_p5)  }
 0x2b6   : > { %v902_v33 = vpop.f32.mrf.mxu0  ;;  %1905 = vmatmul.mubr.bf16.gmra.mxu1 %v957_v32  ;;  %1914 = vmatprep.subr.bf16.mxu0 (%p1143_p5), %v2017_v28  ;;  %v2018_v32 = vld [vmem:[%s2558_s2 + $0x1a8] sm:$0xff] (%p1143_p5)  }
 0x2b7   : > { %v903_v29 = vadd.f32 %v1636_v43, %v902_v33  ;;  %v929_v36 = vmax.f32 %v911_v31, 0.0  ;;  %1952 = vmatpush3.bf16.msra.mxu1 (%p1143_p5), %v2016_v27 }
 0x2b8   : > { %1945 = vmatprep.subr.bf16.mxu1 (%p1143_p5), %v2017_v28 }
 0x2b9   : > { %v927_v38 = vmax.f32 %v903_v29, 0.0  ;;  %v959_v24 = vpack.c.bf16 %v929_v36, %v928_v23  ;;  %1915 = vmatpush3.bf16.msra.mxu0 (%p1143_p5), %v2017_v28  ;;  %v2022_v23 = vld [vmem:[%s2558_s2 + $0x188] sm:$0xff] (%p1143_p5)  }
 0x2ba   : > { %1916 = vmatprep.subr.bf16.mxu0 (%p1143_p5), %v2018_v32 }
 0x2bb   : > { %v958_v39 = vpack.c.bf16 %v927_v38, %v926_v37  ;;  %1953 = vmatpush3.bf16.msra.mxu1 (%p1143_p5), %v2017_v28  ;;  %v2020_v37 = vld [vmem:[%s2558_s2 + $0x198] sm:$0xff] (%p1143_p5)   ;;  %v2021_v38 = vld [vmem:[%s2558_s2 + $0x190] sm:$0xff] (%p1143_p5)  }
 0x2bc   : > { %1946 = vmatprep.subr.bf16.mxu1 (%p1143_p5), %v2018_v32 }
 0x2bd   : > { %1908 = vmatprep.mubr.bf16.mxu1 %v958_v39  ;;  %1917 = vmatpush3.bf16.msra.mxu0 (%p1143_p5), %v2018_v32  ;;  %v2023_v39 = vld [vmem:[%s2558_s2 + $0x180] sm:$0xff] (%p1143_p5)  }
 0x2be   : > { %1909 = vmatmul.mubr.bf16.gmra.mxu1 %v959_v24  ;;  %1918 = vmatprep.subr.bf16.mxu0 (%p1143_p5), %v2019_v34 }
 0x2bf   : > { %1954 = vmatpush3.bf16.msra.mxu1 (%p1143_p5), %v2018_v32 }
 0x2c0   : > { %1947 = vmatprep.subr.bf16.mxu1 (%p1143_p5), %v2019_v34 }
 0x2c1   : > { %1919 = vmatpush3.bf16.msra.mxu0 (%p1143_p5), %v2019_v34 }
 0x2c2   : > { %1920 = vmatprep.subr.bf16.mxu0 (%p1143_p5), %v2020_v37 }
 0x2c3   : > { %1955 = vmatpush3.bf16.msra.mxu1 (%p1143_p5), %v2019_v34 }
 0x2c4   : > { %1948 = vmatprep.subr.bf16.mxu1 (%p1143_p5), %v2020_v37 }
 0x2c5   : > { %1921 = vmatpush3.bf16.msra.mxu0 (%p1143_p5), %v2020_v37 }
 0x2c6   : > { %1922 = vmatprep.subr.bf16.mxu0 (%p1143_p5), %v2021_v38 }
 0x2c7   : > { %1956 = vmatpush3.bf16.msra.mxu1 (%p1143_p5), %v2020_v37 }
 0x2c8   : > { %1949 = vmatprep.subr.bf16.mxu1 (%p1143_p5), %v2021_v38 }
 0x2c9   : > { %1923 = vmatpush3.bf16.msra.mxu0 (%p1143_p5), %v2021_v38 }
 0x2ca   : > { %1924 = vmatprep.subr.bf16.mxu0 (%p1143_p5), %v2022_v23 }
 0x2cb   : > { %1957 = vmatpush3.bf16.msra.mxu1 (%p1143_p5), %v2021_v38 }
 0x2cc   : > { %1950 = vmatprep.subr.bf16.mxu1 (%p1143_p5), %v2022_v23 }
 0x2cd   : > { %1925 = vmatpush3.bf16.msra.mxu0 (%p1143_p5), %v2022_v23 }
 0x2ce   : > { %1926 = vmatprep.subr.bf16.mxu0 (%p1143_p5), %v2023_v39 }
 0x2cf   : > { %1958 = vmatpush3.bf16.msra.mxu1 (%p1143_p5), %v2022_v23 }
 0x2d0   : > { %1951 = vmatprep.subr.bf16.mxu1 (%p1143_p5), %v2023_v39 }
 0x2d1   : > { %1927 = vmatpush3.bf16.msra.mxu0 (%p1143_p5), %v2023_v39 }
 0x2d3   : > { %1959 = vmatpush3.bf16.msra.mxu1 (%p1143_p5), %v2023_v39 }
 0x366   : > { %v1898_v26 = vpop.f32.mrf.mxu1 }
 0x367   : > { %v1057_v40 = vadd.f32 %v1898_v26, %v1663_v22 }
 0x368   : > { %v1048_v41 = vpop.f32.mrf.mxu1 }
 0x369   : > { %v1113_v42 = vmax.f32 %v1057_v40, 0.0  ;;  %v1049_v17 = vadd.f32 %v1663_v22, %v1048_v41 }
 0x36a   : > { %v1899_v18 = vpop.f32.mrf.mxu1 }
 0x36b   : > { %1129 = vst [vmem:[#allocation2 + $0x58] sm:$0xff] %v1113_v42  ;;  %v1111_v20 = vmax.f32 %v1049_v17, 0.0  ;;  %v1060_v16 = vadd.f32 %v1899_v18, %v1663_v22 }
 0x36c   : > { %v1051_v43 = vpop.f32.mrf.mxu1 }
 0x36d   : > { %1127 = vst [vmem:[#allocation2 + $0x30] sm:$0xff] %v1111_v20  ;;  %v1114_v44 = vmax.f32 %v1060_v16, 0.0  ;;  %v1052_v45 = vadd.f32 %v1663_v22, %v1051_v43 }
 0x36e   : > { %v1902_v46 = vpop.f32.mrf.mxu1 }
 0x36f   : > { %1130 = vst [vmem:[#allocation2 + $0x18] sm:$0xff] %v1114_v44  ;;  %v1112_v47 = vmax.f32 %v1052_v45, 0.0  ;;  %v1073_v48 = vadd.f32 %v1902_v46, %v1663_v22 }
 0x370   : > { %v1064_v49 = vpop.f32.mrf.mxu1 }
 0x371   : > { %1128 = vst [vmem:[#allocation2] sm:$0xff] %v1112_v47  ;;  %v1117_v50 = vmax.f32 %v1073_v48, 0.0  ;;  %v1065_v51 = vadd.f32 %v1663_v22, %v1064_v49 }
 0x372   : > { %v1903_v52 = vpop.f32.mrf.mxu1  ;;  %v1150_v24 = vld [vmem:[#allocation2 + $0x58] sm:$0xff] (%p1143_p5) }
 0x373   : > { %1133 = vst [vmem:[#allocation2 + $0x8] sm:$0xff] %v1117_v50  ;;  %v1115_v53 = vmax.f32 %v1065_v51, 0.0  ;;  %v1076_v54 = vadd.f32 %v1903_v52, %v1663_v22  ;;  %v1690_v51 = vld [vmem:[%s2559_s3 + $0x6] ss:$0 sm:$0xff] (%p1143_p5) }
 0x374   : > { %v1067_v55 = vpop.f32.mrf.mxu1  ;;  %v1148_v30 = vld [vmem:[#allocation2 + $0x30] sm:$0xff] (%p1143_p5) }
 0x375   : > { %1131 = vst [vmem:[#allocation2 + $0x50] sm:$0xff] %v1115_v53  ;;  %v1118_v56 = vmax.f32 %v1076_v54, 0.0  ;;  %v1068_v57 = vadd.f32 %v1663_v22, %v1067_v55 }
 0x376   : > { %v1906_v58 = vpop.f32.mrf.mxu1 }
 0x377   : > { %1134 = vst [vmem:[#allocation2 + $0x48] sm:$0xff] %v1118_v56  ;;  %v1116_v59 = vmax.f32 %v1068_v57, 0.0  ;;  %v1089_v60 = vadd.f32 %v1906_v58, %v1663_v22 }
 0x378   : > { %v1080_v61 = vpop.f32.mrf.mxu1  ;;  %v1149_v31 = vld [vmem:[#allocation2] sm:$0xff] (%p1143_p5) }
 0x379   : > { %1132 = vst [vmem:[#allocation2 + $0x68] sm:$0xff] %v1116_v59  ;;  %v1121_v62 = vmax.f32 %v1089_v60, 0.0  ;;  %v1081_v63 = vadd.f32 %v1663_v22, %v1080_v61  ;;  %v1164_v33 = vpack.c.bf16 (%p1143_p5), %v1149_v31, %v1148_v30 }
 0x37a   : > { %v1907_v0 = vpop.f32.mrf.mxu1  ;;  %v1154_v45 = vld [vmem:[#allocation2 + $0x8] sm:$0xff] (%p1143_p5) }
 0x37b   : > { %1137 = vst [vmem:[#allocation2 + $0x10] sm:$0xff] %v1121_v62  ;;  %v1119_v1 = vmax.f32 %v1081_v63, 0.0  ;;  %v1092_v2 = vadd.f32 %v1907_v0, %v1663_v22  ;;  %1928 = vmatprep.mubr.bf16.mxu0 (%p1143_p5), %v1164_v33 }
 0x37c   : > { %v1083_v3 = vpop.f32.mrf.mxu1  ;;  %v1152_v41 = vld [vmem:[#allocation2 + $0x50] sm:$0xff] (%p1143_p5) }
 0x37d   : > { %1135 = vst [vmem:[#allocation2 + $0x40] sm:$0xff] %v1119_v1  ;;  %v1122_v4 = vmax.f32 %v1092_v2, 0.0  ;;  %v1084_v5 = vadd.f32 %v1663_v22, %v1083_v3 }
 0x37e   : > { %v1910_v6 = vpop.f32.mrf.mxu1  ;;  %v1155_v46 = vld [vmem:[#allocation2 + $0x48] sm:$0xff] (%p1143_p5) }
 0x37f   : > { %1138 = vst [vmem:[#allocation2 + $0x38] sm:$0xff] %v1122_v4  ;;  %v1120_v7 = vmax.f32 %v1084_v5, 0.0  ;;  %v1105_v8 = vadd.f32 %v1910_v6, %v1663_v22  ;;  %v1167_v49 = vpack.c.bf16 (%p1143_p5), %v1155_v46, %v1154_v45 }
 0x380   : > { %v1096_v9 = vpop.f32.mrf.mxu1  ;;  %v1153_v42 = vld [vmem:[#allocation2 + $0x68] sm:$0xff] (%p1143_p5) }
 0x381   : > { %1136 = vst [vmem:[#allocation2 + $0x20] sm:$0xff] %v1120_v7  ;;  %v1125_v10 = vmax.f32 %v1105_v8, 0.0  ;;  %v1097_v11 = vadd.f32 %v1663_v22, %v1096_v9  ;;  %v1166_v43 = vpack.c.bf16 (%p1143_p5), %v1153_v42, %v1152_v41 }
 0x382   : > { %v1911_v12 = vpop.f32.mrf.mxu1  ;;  %v1158_v26 = vld [vmem:[#allocation2 + $0x10] sm:$0xff] (%p1143_p5) }
 0x383   : > { %1141 = vst [vmem:[#allocation2 + $0x78] sm:$0xff] %v1125_v10  ;;  %v1123_v13 = vmax.f32 %v1097_v11, 0.0  ;;  %v1108_v14 = vadd.f32 %v1911_v12, %v1663_v22 }
 0x384   : > { %v1099_v15 = vpop.f32.mrf.mxu1  ;;  %v1156_v35 = vld [vmem:[#allocation2 + $0x40] sm:$0xff] (%p1143_p5) }
 0x385   : > { %1139 = vst [vmem:[#allocation2 + $0x60] sm:$0xff] %v1123_v13  ;;  %v1126_v19 = vmax.f32 %v1108_v14, 0.0  ;;  %v1100_v21 = vadd.f32 %v1663_v22, %v1099_v15  ;;  %1147 = sbr.rel (!%p1143_p5) target bundleno = 1450 (0x5aa), region = 52  ;;  %v1151_v22 = vld [vmem:[#allocation2 + $0x18] sm:$0xff] (%p1143_p5) }
 0x386   : > { %v1159_v40 = vld [vmem:[#allocation2 + $0x38] sm:$0xff] (%p1143_p5)  ;;  %v1165_v20 = vpack.c.bf16 (%p1143_p5), %v1151_v22, %v1150_v24 }
 0x387   : > { %1142 = vst [vmem:[#allocation2 + $0x28] sm:$0xff] %v1126_v19  ;;  %v1124_v25 = vmax.f32 %v1100_v21, 0.0  ;;  %v1169_v16 = vpack.c.bf16 (%p1143_p5), %v1159_v40, %v1158_v26 }
 0x388   : > { %v1157_v29 = vld [vmem:[#allocation2 + $0x20] sm:$0xff] (%p1143_p5)  ;;  %1929 = vmatmul.mubr.bf16.vlgmr.msra.gmra.mxu0 (%p1143_p5), %v1165_v20 }
 0x389   : > { %1140 = vst [vmem:[#allocation2 + $0x70] sm:$0xff] %v1124_v25  ;;  %v1168_v36 = vpack.c.bf16 (%p1143_p5), %v1157_v29, %v1156_v35  ;;  %1932 = vmatprep.mubr.bf16.mxu0 (%p1143_p5), %v1166_v43 }
 0x38a   : > { %v1162_v47 = vld [vmem:[#allocation2 + $0x78] sm:$0xff] }
 0x38b   : > { %1936 = vmatprep.mubr.bf16.mxu1 %v1168_v36 }
 0x38c   : > { %v1160_v17 = vld [vmem:[#allocation2 + $0x60] sm:$0xff]  ;;  %1937 = vmatmul.mubr.bf16.vlgmr.msra.gmra.mxu1 %v1169_v16 }
 0x38e   : > { %v1163_v48 = vld [vmem:[#allocation2 + $0x28] sm:$0xff] }
 0x38f   : > { %v1171_v50 = vpack.c.bf16 %v1163_v48, %v1162_v47 }
 0x390   : > { %v1161_v18 = vld [vmem:[#allocation2 + $0x70] sm:$0xff]  ;;  %1933 = vmatmul.mubr.bf16.gmra.mxu0 %v1167_v49 }
 0x391   : > { %v1170_v44 = vpack.c.bf16 %v1161_v18, %v1160_v17 }
 0x393   : > { %1940 = vmatprep.mubr.bf16.mxu1 %v1170_v44 }
 0x394   : > { %1941 = vmatmul.mubr.bf16.gmra.mxu1 %v1171_v50 }
 0x448   : > { %v1930_v52 = vpop.f32.mrf.mxu0 }
 0x449   : > { %v2355_v54 = vadd.f32 %v1930_v52, %v1690_v51 }
 0x44a   : > { %v1279_v56 = vpop.f32.mrf.mxu0 }
 0x44b   : > { %1346 = vmax.xlane.f32.xlu1 %v2355_v54  ;;  %v2361_v60 = vadd.f32 %v1690_v51, %v1279_v56 }
 0x44c   : > { %v1938_v53 = vpop.f32.mrf.mxu1  ;;  %v1931_v58 = vpop.f32.mrf.mxu0 }
 0x44d   : > { %v2357_v55 = vadd.f32 %v1938_v53, %v1690_v51  ;;  %v2363_v61 = vadd.f32 %v1931_v58, %v1690_v51 }
 0x44e   : > { %v1311_v57 = vpop.f32.mrf.mxu1  ;;  %v1282_v62 = vpop.f32.mrf.mxu0 }
 0x44f   : > { %1362 = vmax.xlane.f32.xlu0 %v2357_v55  ;;  %1348 = vmax.xlane.f32.xlu1 %v2363_v61  ;;  %v2367_v1 = vadd.f32 %v1690_v51, %v1311_v57  ;;  %v2373_v5 = vadd.f32 %v1690_v51, %v1282_v62 }
 0x450   : > { %v1939_v59 = vpop.f32.mrf.mxu1  ;;  %v1934_v0 = vpop.f32.mrf.mxu0 }
 0x451   : > { %v2369_v2 = vadd.f32 %v1939_v59, %v1690_v51  ;;  %v2377_v9 = vadd.f32 %v1934_v0, %v1690_v51 }
 0x452   : > { %v1314_v63 = vpop.f32.mrf.mxu1  ;;  %v1295_v3 = vpop.f32.mrf.mxu0 }
 0x453   : > { %1342 = vmax.xlane.f32.xlu0 %v2361_v60  ;;  %1364 = vmax.xlane.f32.xlu1 %v2369_v2  ;;  %v2375_v6 = vadd.f32 %v1690_v51, %v1314_v63  ;;  %v2385_v13 = vadd.f32 %v1690_v51, %v1295_v3 }
 0x454   : > { %v1942_v4 = vpop.f32.mrf.mxu1  ;;  %v1935_v7 = vpop.f32.mrf.mxu0 }
 0x455   : > { %v2379_v10 = vadd.f32 %v1935_v7, %v1690_v51  ;;  %v2397_v25 = vadd.f32 %v1942_v4, %v1690_v51 }
 0x456   : > { %v1327_v8 = vpop.f32.mrf.mxu1  ;;  %v1298_v11 = vpop.f32.mrf.mxu0 }
 0x457   : > { %1358 = vmax.xlane.f32.xlu0 %v2367_v1  ;;  %1360 = vmax.xlane.f32.xlu1 %v2375_v6  ;;  %v2387_v14 = vadd.f32 %v1690_v51, %v1298_v11  ;;  %v2391_v19 = vadd.f32 %v1690_v51, %v1327_v8 }
 0x458   : > { %v1943_v12 = vpop.f32.mrf.mxu1 }
 0x459   : > { %v2399_v27 = vadd.f32 %v1943_v12, %v1690_v51 }
 0x45a   : > { %v1330_v15 = vpop.f32.mrf.mxu1 }
 0x45b   : > { %1344 = vmax.xlane.f32.xlu0 %v2373_v5  ;;  %1356 = vmax.xlane.f32.xlu1 %v2379_v10  ;;  %v2393_v21 = vadd.f32 %v1690_v51, %v1330_v15 }
 0x45f   : > { %1354 = vmax.xlane.f32.xlu0 %v2377_v9  ;;  %1352 = vmax.xlane.f32.xlu1 %v2387_v14 }
 0x463   : > { %1350 = vmax.xlane.f32.xlu0 %v2385_v13  ;;  %1368 = vmax.xlane.f32.xlu1 %v2393_v21 }
 0x467   : > { %1366 = vmax.xlane.f32.xlu0 %v2391_v19  ;;  %1372 = vmax.xlane.f32.xlu1 %v2399_v27 }
 0x46b   : > { %1370 = vmax.xlane.f32.xlu0 %v2397_v25 }
 0x4d4   : > { %v2405_v32 = vpop.xlane.xlu1 %1346 }
 0x4d5   : > { %v1376_v34 = vsub.f32 %v2355_v54, %v2405_v32 }
 0x4d7   : > { %v1394_v31 = vmul.f32 1.442695, %v1376_v34 }
 0x4d8   : > { %v2403_v28 = vpop.xlane.xlu0 %1362  ;;  %v2411_v35 = vpop.xlane.xlu1 %1348 }
 0x4d9   : > { %v1384_v30 = vsub.f32 %v2357_v55, %v2403_v28  ;;  %v1377_v29 = vsub.f32 %v2363_v61, %v2411_v35  ;;  %2024 = vpow2.f32 %v1394_v31 }
 0x4db   : > { %v1410_v36 = vmul.f32 1.442695, %v1384_v30  ;;  %v1396_v38 = vmul.f32 1.442695, %v1377_v29 }
 0x4dc   : > { %v2413_v33 = vpop.xlane.xlu0 %1342  ;;  %v2419_v23 = vpop.xlane.xlu1 %1364 }
 0x4dd   : > { %v1374_v37 = vsub.f32 %v2361_v60, %v2413_v33  ;;  %2026 = vpow2.f32 %v1396_v38  ;;  %v1385_v24 = vsub.f32 %v2369_v2, %v2419_v23 }
 0x4de   : > { %2028 = vpow2.f32 %v1410_v36 }
 0x4df   : > { %v1390_v26 = vmul.f32 1.442695, %v1374_v37  ;;  %v1412_v40 = vmul.f32 1.442695, %v1385_v24 }
 0x4e0   : > { %v2421_v39 = vpop.xlane.xlu0 %1358  ;;  %v2427_v41 = vpop.xlane.xlu1 %1360 }
 0x4e1   : > { %v1382_v22 = vsub.f32 %v2367_v1, %v2421_v39  ;;  %2030 = vpow2.f32 %v1412_v40  ;;  %v1383_v18 = vsub.f32 %v2375_v6, %v2427_v41 }
 0x4e2   : > { %2032 = vpow2.f32 %v1390_v26 }
 0x4e3   : > { %v1406_v17 = vmul.f32 1.442695, %v1382_v22  ;;  %v1408_v45 = vmul.f32 1.442695, %v1383_v18 }
 0x4e4   : > { %v2429_v42 = vpop.xlane.xlu0 %1344  ;;  %v2435_v43 = vpop.xlane.xlu1 %1356 }
 0x4e5   : > { %v1375_v20 = vsub.f32 %v2373_v5, %v2429_v42  ;;  %2034 = vpow2.f32 %v1406_v17  ;;  %v1381_v46 = vsub.f32 %v2379_v10, %v2435_v43 }
 0x4e6   : > { %v2025_v48 = vpop.eup %2024 }
 0x4e7   : > { %v1392_v16 = vmul.f32 1.442695, %v1375_v20  ;;  %1426 = vadd.xlane.f32.xlu0 %v2025_v48  ;;  %v1404_v52 = vmul.f32 1.442695, %v1381_v46 }
 0x4e8   : > { %v2437_v44 = vpop.xlane.xlu0 %1354  ;;  %v2443_v50 = vpop.xlane.xlu1 %1352 }
 0x4e9   : > { %v1380_v47 = vsub.f32 %v2377_v9, %v2437_v44  ;;  %2036 = vpow2.f32 %v1392_v16  ;;  %v1379_v53 = vsub.f32 %v2387_v14, %v2443_v50 }
 0x4ea   : > { %2038 = vpow2.f32 %v1408_v45  ;;  %v2027_v57 = vpop.eup %2026 }
 0x4eb   : > { %v1402_v49 = vmul.f32 1.442695, %v1380_v47  ;;  %v2029_v58 = vpop.eup %2028  ;;  %1428 = vadd.xlane.f32.xlu1 %v2027_v57  ;;  %v1400_v0 = vmul.f32 1.442695, %v1379_v53 }
 0x4ec   : > { %v2445_v51 = vpop.xlane.xlu0 %1350  ;;  %1442 = vadd.xlane.f32.xlu0 %v2029_v58  ;;  %v2451_v62 = vpop.xlane.xlu1 %1368 }
 0x4ed   : > { %v1378_v56 = vsub.f32 %v2385_v13, %v2445_v51  ;;  %2040 = vpow2.f32 %v1402_v49  ;;  %v1387_v3 = vsub.f32 %v2393_v21, %v2451_v62 }
 0x4ee   : > { %2042 = vpow2.f32 %v1404_v52  ;;  %v2031_v7 = vpop.eup %2030 }
 0x4ef   : > { %v1398_v59 = vmul.f32 1.442695, %v1378_v56  ;;  %v2033_v8 = vpop.eup %2032  ;;  %1444 = vadd.xlane.f32.xlu1 %v2031_v7  ;;  %v1416_v34 = vmul.f32 1.442695, %v1387_v3 }
 0x4f0   : > { %v2453_v63 = vpop.xlane.xlu0 %1366  ;;  %1422 = vadd.xlane.f32.xlu0 %v2033_v8  ;;  %v2459_v12 = vpop.xlane.xlu1 %1372 }
 0x4f1   : > { %v1386_v4 = vsub.f32 %v2391_v19, %v2453_v63  ;;  %2044 = vpow2.f32 %v1398_v59  ;;  %v1389_v29 = vsub.f32 %v2399_v27, %v2459_v12 }
 0x4f2   : > { %2046 = vpow2.f32 %v1400_v0  ;;  %v2035_v31 = vpop.eup %2034 }
 0x4f3   : > { %v1414_v11 = vmul.f32 1.442695, %v1386_v4  ;;  %v1420_v24 = vmul.f32 1.442695, %v1389_v29 }
 0x4f4   : > { %v2461_v15 = vpop.xlane.xlu0 %1370  ;;  %1438 = vadd.xlane.f32.xlu0 %v2035_v31 }
 0x4f5   : > { %v1388_v30 = vsub.f32 %v2397_v25, %v2461_v15  ;;  %2048 = vpow2.f32 %v1414_v11 }
 0x4f6   : > { %v2037_v36 = vpop.eup %2036  ;;  %2050 = vpow2.f32 %v1416_v34 }
 0x4f7   : > { %v1418_v37 = vmul.f32 1.442695, %v1388_v30  ;;  %1424 = vadd.xlane.f32.xlu1 %v2037_v36  ;;  %v2039_v38 = vpop.eup %2038 }
 0x4f9   : > { %2052 = vpow2.f32 %v1418_v37 }
 0x4fa   : > { %v2041_v22 = vpop.eup %2040  ;;  %2054 = vpow2.f32 %v1420_v24 }
 0x4fb   : > { %1440 = vadd.xlane.f32.xlu1 %v2039_v38  ;;  %1434 = vadd.xlane.f32.xlu0 %v2041_v22  ;;  %v2043_v26 = vpop.eup %2042 }
 0x4fe   : > { %v2045_v40 = vpop.eup %2044 }
 0x4ff   : > { %1436 = vadd.xlane.f32.xlu1 %v2043_v26  ;;  %1430 = vadd.xlane.f32.xlu0 %v2045_v40  ;;  %v2047_v17 = vpop.eup %2046 }
 0x502   : > { %v2049_v18 = vpop.eup %2048 }
 0x503   : > { %1432 = vadd.xlane.f32.xlu1 %v2047_v17  ;;  %1446 = vadd.xlane.f32.xlu0 %v2049_v18  ;;  %v2051_v20 = vpop.eup %2050 }
 0x506   : > { %v2053_v16 = vpop.eup %2052 }
 0x507   : > { %1448 = vadd.xlane.f32.xlu1 %v2051_v20  ;;  %1450 = vadd.xlane.f32.xlu0 %v2053_v16  ;;  %v2055_v45 = vpop.eup %2054 }
 0x50b   : > { %1452 = vadd.xlane.f32.xlu1 %v2055_v45 }
 0x570   : > { %v1427_v46 = vpop.xlane.xlu0 %1426 }
 0x571   : > { %2056 = vlog2.f32 %v1427_v46 }
 0x574   : > { %v1429_v47 = vpop.xlane.xlu1 %1428 }
 0x575   : > { %2058 = vlog2.f32 %v1429_v47  ;;  %v1443_v48 = vpop.xlane.xlu0 %1442 }
 0x576   : > { %2060 = vlog2.f32 %v1443_v48 }
 0x578   : > { %v1445_v49 = vpop.xlane.xlu1 %1444 }
 0x579   : > { %2062 = vlog2.f32 %v1445_v49  ;;  %v1423_v52 = vpop.xlane.xlu0 %1422 }
 0x57a   : > { %2064 = vlog2.f32 %v1423_v52 }
 0x57d   : > { %v1439_v56 = vpop.xlane.xlu0 %1438 }
 0x57e   : > { %v2057_v57 = vpop.eup %2056 }
 0x57f   : > { %v1459_v58 = vmul.f32 0.6931472, %v2057_v57 }
 0x580   : > { %v1425_v53 = vpop.xlane.xlu1 %1424 }
 0x581   : > { %2066 = vlog2.f32 %v1425_v53  ;;  %v1488_v4 = vadd.f32 %v1459_v58, %v2405_v32 }
 0x582   : > { %2068 = vlog2.f32 %v1439_v56  ;;  %v2059_v3 = vpop.eup %2058 }
 0x583   : > { %v2061_v7 = vpop.eup %2060  ;;  %v1461_v8 = vmul.f32 0.6931472, %v2059_v3  ;;  %v1504_v11 = vsub.f32 %v2355_v54, %v1488_v4 }
 0x584   : > { %v1441_v59 = vpop.xlane.xlu1 %1440  ;;  %v1435_v0 = vpop.xlane.xlu0 %1434  ;;  %v1475_v34 = vmul.f32 0.6931472, %v2061_v7 }
 0x585   : > { %2070 = vlog2.f32 %v1441_v59  ;;  %v1489_v30 = vadd.f32 %v1461_v8, %v2411_v35  ;;  %1520 = vst [vmem:[%s2560_s4 + $0x10] sm:$0xff] %v1504_v11 }
 0x586   : > { %2072 = vlog2.f32 %v1435_v0  ;;  %v2063_v36 = vpop.eup %2062  ;;  %v1496_v37 = vadd.f32 %v1475_v34, %v2403_v28 }
 0x587   : > { %v2065_v32 = vpop.eup %2064  ;;  %v1505_v38 = vsub.f32 %v2363_v61, %v1489_v30  ;;  %v1477_v24 = vmul.f32 0.6931472, %v2063_v36 }
 0x588   : > { %v1437_v31 = vpop.xlane.xlu1 %1436  ;;  %v1431_v29 = vpop.xlane.xlu0 %1430  ;;  %v1512_v54 = vsub.f32 %v2357_v55, %v1496_v37  ;;  %v1455_v22 = vmul.f32 0.6931472, %v2065_v32 }
 0x589   : > { %2074 = vlog2.f32 %v1437_v31  ;;  %1521 = vst [vmem:[%s2560_s4 + $0x18] sm:$0xff] %v1505_v38  ;;  %v1497_v35 = vadd.f32 %v1477_v24, %v2419_v23 }
 0x58a   : > { %2076 = vlog2.f32 %v1431_v29  ;;  %1528 = vst [vmem:[%s2560_s4 + $0x50] sm:$0xff] %v1512_v54  ;;  %v1486_v28 = vadd.f32 %v1455_v22, %v2413_v33 }
 0x58b   : > { %v1513_v17 = vsub.f32 %v2369_v2, %v1497_v35 }
 0x58c   : > { %v1433_v26 = vpop.xlane.xlu1 %1432  ;;  %v1447_v40 = vpop.xlane.xlu0 %1446  ;;  %v1502_v18 = vsub.f32 %v2361_v60, %v1486_v28 }
 0x58d   : > { %2078 = vlog2.f32 %v1433_v26  ;;  %1529 = vst [vmem:[%s2560_s4 + $0x58] sm:$0xff] %v1513_v17 }
 0x58e   : > { %v2067_v61 = vpop.eup %2066  ;;  %2080 = vlog2.f32 %v1447_v40  ;;  %1518 = vst [vmem:[%s2560_s4] sm:$0xff] %v1502_v18 }
 0x58f   : > { %v2069_v55 = vpop.eup %2068  ;;  %v1457_v20 = vmul.f32 0.6931472, %v2067_v61 }
 0x590   : > { %v1471_v23 = vmul.f32 0.6931472, %v2069_v55  ;;  %v1449_v16 = vpop.xlane.xlu1 %1448  ;;  %v1451_v45 = vpop.xlane.xlu0 %1450 }
 0x591   : > { %v1487_v33 = vadd.f32 %v1457_v20, %v2429_v42  ;;  %2082 = vlog2.f32 %v1449_v16 }
 0x592   : > { %v2071_v2 = vpop.eup %2070  ;;  %v1494_v46 = vadd.f32 %v1471_v23, %v2421_v39  ;;  %2084 = vlog2.f32 %v1451_v45 }
 0x593   : > { %v2073_v60 = vpop.eup %2072  ;;  %v1503_v47 = vsub.f32 %v2373_v5, %v1487_v33  ;;  %v1473_v48 = vmul.f32 0.6931472, %v2071_v2 }
 0x594   : > { %v1510_v49 = vsub.f32 %v2367_v1, %v1494_v46  ;;  %v1467_v52 = vmul.f32 0.6931472, %v2073_v60  ;;  %v1453_v53 = vpop.xlane.xlu1 %1452 }
 0x595   : > { %1519 = vst [vmem:[%s2560_s4 + $0x8] sm:$0xff] %v1503_v47  ;;  %v1495_v56 = vadd.f32 %v1473_v48, %v2427_v41  ;;  %2086 = vlog2.f32 %v1453_v53 }
 0x596   : > { %v2075_v42 = vpop.eup %2074  ;;  %1526 = vst [vmem:[%s2560_s4 + $0x40] sm:$0xff] %v1510_v49  ;;  %v1492_v39 = vadd.f32 %v1467_v52, %v2437_v44 }
 0x597   : > { %v2077_v5 = vpop.eup %2076  ;;  %v1511_v57 = vsub.f32 %v2375_v6, %v1495_v56  ;;  %v1469_v1 = vmul.f32 0.6931472, %v2075_v42 }
 0x598   : > { %v1508_v58 = vsub.f32 %v2377_v9, %v1492_v39  ;;  %v1463_v59 = vmul.f32 0.6931472, %v2077_v5 }
 0x599   : > { %1527 = vst [vmem:[%s2560_s4 + $0x48] sm:$0xff] %v1511_v57  ;;  %v1493_v41 = vadd.f32 %v1469_v1, %v2435_v43 }
 0x59a   : > { %v2079_v0 = vpop.eup %2078  ;;  %1524 = vst [vmem:[%s2560_s4 + $0x30] sm:$0xff] %v1508_v58  ;;  %v1490_v44 = vadd.f32 %v1463_v59, %v2445_v51 }
 0x59b   : > { %v2081_v3 = vpop.eup %2080  ;;  %v1509_v6 = vsub.f32 %v2379_v10, %v1493_v41  ;;  %v1465_v4 = vmul.f32 0.6931472, %v2079_v0 }
 0x59c   : > { %v1506_v9 = vsub.f32 %v2385_v13, %v1490_v44  ;;  %v1479_v7 = vmul.f32 0.6931472, %v2081_v3 }
 0x59d   : > { %1525 = vst [vmem:[%s2560_s4 + $0x38] sm:$0xff] %v1509_v6  ;;  %v1491_v43 = vadd.f32 %v1465_v4, %v2443_v50 }
 0x59e   : > { %v2083_v8 = vpop.eup %2082  ;;  %1522 = vst [vmem:[%s2560_s4 + $0x20] sm:$0xff] %v1506_v9  ;;  %v1498_v51 = vadd.f32 %v1479_v7, %v2453_v63 }
 0x59f   : > { %v2085_v11 = vpop.eup %2084  ;;  %v1507_v10 = vsub.f32 %v2387_v14, %v1491_v43  ;;  %v1481_v34 = vmul.f32 0.6931472, %v2083_v8 }
 0x5a0   : > { %v1514_v13 = vsub.f32 %v2391_v19, %v1498_v51  ;;  %v1483_v30 = vmul.f32 0.6931472, %v2085_v11 }
 0x5a1   : > { %1523 = vst [vmem:[%s2560_s4 + $0x28] sm:$0xff] %v1507_v10  ;;  %v1499_v50 = vadd.f32 %v1481_v34, %v2451_v62 }
 0x5a2   : > { %v2087_v31 = vpop.eup %2086  ;;  %1530 = vst [vmem:[%s2560_s4 + $0x60] sm:$0xff] %v1514_v13  ;;  %v1500_v63 = vadd.f32 %v1483_v30, %v2461_v15 }
 0x5a3   : > { %v1515_v29 = vsub.f32 %v2393_v21, %v1499_v50  ;;  %v1485_v14 = vmul.f32 0.6931472, %v2087_v31 }
 0x5a4   : > { %v1516_v36 = vsub.f32 %v2397_v25, %v1500_v63 }
 0x5a5   : > { %1531 = vst [vmem:[%s2560_s4 + $0x68] sm:$0xff] %v1515_v29  ;;  %v1501_v19 = vadd.f32 %v1485_v14, %v2459_v12 }
 0x5a6   : > { %1532 = vst [vmem:[%s2560_s4 + $0x70] sm:$0xff] %v1516_v36 }
 0x5a7   : > { %v1517_v62 = vsub.f32 %v2399_v27, %v1501_v19 }
 0x5a9   : > { %1533 = vst [vmem:[%s2560_s4 + $0x78] sm:$0xff] %v1517_v62 }
 0x5aa PF: > { %s14_s17 = sadd.s32 1, %s2110_s17   ;;  %s2561_s15 = smov %s2106_s16 }
 0x5ab   : > { %p11_p6 = scmp.ge.s32.totalorder %s14_s17, 4   ;;  %s2562_s16 = smov %s2564_s18 }
 0x5ad   :  { %13 = sbr.rel (!%p11_p6) target bundleno = 2 (0x2), region = 87 }

</bundles_post_ra>
